<compile_context>
chip_gen: v7x
topology: tpu7x:2x2x1
jax: 0.10.0
libtpu: 0.0.40
codegen_flags: <defaults>
</compile_context>

<pallas_src>
import functools

import jax
import jax.numpy as jnp
from jax.experimental import pallas as pl
from jax.experimental.pallas import tpu as pltpu

IN_FEATURES = 130 * 13          # 1690 (full-last-dim block, no lane padding)
H1, H2 = 512, 256
H3 = 64
H3_PAD = 128                    # lane-dense hidden for layer 3
N_CLASSES = 7                   # len(mapping)
OUT_PAD = 128                   # lane-dense output block
BN_EPS = 1e-5


def _round_up(x, m):
    return (x + m - 1) // m * m


def _choose_tile_b(batch, max_tile):
    """Pick (tile_b, padded_batch).

    Rules (perf review #1/#3/#4):
      - tile >= 8 (f32 sublane alignment)
      - at most ~25% of rows are zero padding
      - grid >= 2 whenever batch > 8, so both v7x TensorCores get work
      - otherwise as large as possible (amortize per-grid-step overhead)
    """
    max_tile = max(8, _round_up(max_tile, 8))
    if batch <= 8:
        return 8, 8
    tb = max_tile
    while tb > 8:
        bp = _round_up(batch, tb)
        waste_ok = (bp - batch) * 4 <= bp      # <= 25% padded rows
        multi_step = bp // tb >= 2             # both v7x cores get work
        if waste_ok and multi_step:
            break
        tb //= 2
    tb = max(8, _round_up(tb, 8))
    bp = _round_up(batch, tb)
    return tb, bp


# --------------------------------------------------------------------------
# Kernel
# --------------------------------------------------------------------------
def _mlp_kernel(x_ref,
                w1_ref, c1_ref,
                w2_ref, c2_ref,
                w3_ref, c3_ref,
                w4_ref, c4_ref,
                o_ref):
    """Fused 4-layer MLP.  BN folded into (w, c); dropout = identity.

    x arrives as f32 (tb, 1690) and is cast to bf16 in-kernel; all matmuls are
    bf16 on the MXU with f32 accumulation; ReLU runs in packed bf16.
    """
    h = x_ref[...].astype(jnp.bfloat16)                          # (tb, 1690)

    # fc1 (+folded bn1) + relu      -- contraction K=1690, Mosaic pads internally
    z = jnp.dot(h, w1_ref[...], preferred_element_type=jnp.float32) + c1_ref[...]
    h = jnp.maximum(z.astype(jnp.bfloat16), 0.0)                 # bf16 ReLU

    # fc2 (+folded bn2) + relu
    z = jnp.dot(h, w2_ref[...], preferred_element_type=jnp.float32) + c2_ref[...]
    h = jnp.maximum(z.astype(jnp.bfloat16), 0.0)

    # fc3 (+folded bn3) + relu      (H3 zero-padded 64 -> 128)
    z = jnp.dot(h, w3_ref[...], preferred_element_type=jnp.float32) + c3_ref[...]
    h = jnp.maximum(z.astype(jnp.bfloat16), 0.0)

    # output linear (classes zero-padded 7 -> 128); store bf16, lane-dense
    z = jnp.dot(h, w4_ref[...], preferred_element_type=jnp.float32) + c4_ref[...]
    o_ref[...] = z.astype(o_ref.dtype)


# --------------------------------------------------------------------------
# Offline parameter preparation: fold BN, pad for lane density, cast to bf16.
# NOTE: expects weights in (in, out) layout; transpose real PyTorch nn.Linear
# weights ((out, in)) before calling this.
# --------------------------------------------------------------------------
def prepare_params(params):
    def fold(w, b, g, be, m, v):
        s = g / jnp.sqrt(v + BN_EPS)                 # per-output-feature scale
        return w * s[None, :], b * s + (be - m * s)  # W', c

    w1, c1 = fold(params["w1"], params["b1"], params["bn1_g"], params["bn1_b"],
                  params["bn1_m"], params["bn1_v"])
    w2, c2 = fold(params["w2"], params["b2"], params["bn2_g"], params["bn2_b"],
                  params["bn2_m"], params["bn2_v"])
    w3, c3 = fold(params["w3"], params["b3"], params["bn3_g"], params["bn3_b"],
                  params["bn3_m"], params["bn3_v"])
    w4, c4 = params["w4"], params["b4"]

    # Zero padding (numerically exact): H3 and output lane dims only.
    w3 = jnp.pad(w3, ((0, 0), (0, H3_PAD - H3)))
    c3 = jnp.pad(c3, ((0, H3_PAD - H3),))
    w4 = jnp.pad(w4, ((0, H3_PAD - H3), (0, OUT_PAD - N_CLASSES)))
    c4 = jnp.pad(c4, ((0, OUT_PAD - N_CLASSES),))

    # TODO(synk): optional v7x-only fp8 quantization of w1 (84% of FLOPs) with
    # per-channel scales folded into c1 -- requires accuracy validation.
    as_w = lambda w: w.astype(jnp.bfloat16)
    as_c = lambda c: c.reshape(1, -1).astype(jnp.float32)
    return {
        "w1": as_w(w1), "c1": as_c(c1),
        "w2": as_w(w2), "c2": as_c(c2),
        "w3": as_w(w3), "c3": as_c(c3),
        "w4": as_w(w4), "c4": as_c(c4),
    }


# --------------------------------------------------------------------------
# Forward wrapper
# --------------------------------------------------------------------------
@functools.partial(jax.jit, static_argnames=("tile_b",))
def audio_classification_forward(x, prep, *, tile_b=512):
    """x: (B, 130, 13) f32.  prep: prepare_params() output.  Returns (B, 7) f32."""
    B = x.shape[0]
    x_flat = x.reshape(B, IN_FEATURES)           # contiguous reshape, no copy pass

    tb, bp = _choose_tile_b(B, tile_b)
    if bp != B:                                  # pad only the (few) batch rows
        x_flat = jnp.pad(x_flat, ((0, bp - B), (0, 0)))

    grid_b = bp // tb

    # x is batch-tiled; full last dim (1690 == array dim, so the (8,128) rule
    # is satisfied without lane padding).  If profiling still shows exposed
    # input DMA on v6e, add pipeline_mode=pl.Buffered(3) here.
    x_spec = pl.BlockSpec((tb, IN_FEATURES), lambda i: (i, 0))

    def resident_spec(shape):                    # weights/biases: same block each step
        return pl.BlockSpec(shape, lambda i: (0, 0))

    operands = [x_flat,
                prep["w1"], prep["c1"],
                prep["w2"], prep["c2"],
                prep["w3"], prep["c3"],
                prep["w4"], prep["c4"]]
    in_specs = [x_spec] + [resident_spec(op.shape) for op in operands[1:]]

    out = pl.pallas_call(
        _mlp_kernel,
        out_shape=jax.ShapeDtypeStruct((bp, OUT_PAD), jnp.bfloat16),
        grid_spec=pltpu.PrefetchScalarGridSpec(
            num_scalar_prefetch=0,
            grid=(grid_b,),
            in_specs=in_specs,
            out_specs=pl.BlockSpec((tb, OUT_PAD), lambda i: (i, 0)),
        ),
        compiler_params=pltpu.CompilerParams(
            dimension_semantics=(pltpu.PARALLEL,),   # batch axis independent
            vmem_limit_bytes=32 << 20,               # ~15 MiB footprint @ tb=512
        ),
    )(*operands)

    return out[:B, :N_CLASSES].astype(jnp.float32)


# --------------------------------------------------------------------------
# References
# --------------------------------------------------------------------------
def reference_forward_prepared(x, prep):
    """Pure-JAX reference doing the same bf16-weight / f32-accum math."""
    B = x.shape[0]
    h = x.reshape(B, IN_FEATURES).astype(jnp.bfloat16)

    def layer(h, w, c):
        z = jnp.dot(h, w, preferred_element_type=jnp.float32) + c
        return jnp.maximum(z.astype(jnp.bfloat16), 0.0)

    h = layer(h, prep["w1"], prep["c1"])
    h = layer(h, prep["w2"], prep["c2"])
    h = layer(h, prep["w3"], prep["c3"])
    out = (jnp.dot(h, prep["w4"], preferred_element_type=jnp.float32)
           + prep["c4"]).astype(jnp.bfloat16)
    return out[:, :N_CLASSES].astype(jnp.float32)


def reference_forward_f32(x, params):
    """Full-precision eval-mode PyTorch semantics (BN running stats, no dropout)."""
    h = x.reshape(x.shape[0], -1)

    def layer(h, w, b, g, be, m, v):
        z = h @ w + b
        z = (z - m) / jnp.sqrt(v + BN_EPS) * g + be
        return jnp.maximum(z, 0.0)

    h = layer(h, params["w1"], params["b1"], params["bn1_g"], params["bn1_b"],
              params["bn1_m"], params["bn1_v"])
    h = layer(h, params["w2"], params["b2"], params["bn2_g"], params["bn2_b"],
              params["bn2_m"], params["bn2_v"])
    h = layer(h, params["w3"], params["b3"], params["bn3_g"], params["bn3_b"],
              params["bn3_m"], params["bn3_v"])
    return h @ params["w4"] + params["b4"]


# --------------------------------------------------------------------------
# Deterministic synthetic parameters (PyTorch layer shapes, (in, out) layout)
# --------------------------------------------------------------------------
def init_params(key):
    ks = jax.random.split(key, 20)

    def lin(kw, kb, fan_in, fan_out):
        bound = 1.0 / jnp.sqrt(fan_in)
        w = jax.random.uniform(kw, (fan_in, fan_out), jnp.float32, -bound, bound)
        b = jax.random.uniform(kb, (fan_out,), jnp.float32, -bound, bound)
        return w, b

    w1, b1 = lin(ks[0], ks[1], IN_FEATURES, H1)
    w2, b2 = lin(ks[2], ks[3], H1, H2)
    w3, b3 = lin(ks[4], ks[5], H2, H3)
    w4, b4 = lin(ks[6], ks[7], H3, N_CLASSES)

    def bn(kg, kb, km, kv, n):
        g = 1.0 + 0.1 * jax.random.normal(kg, (n,), jnp.float32)
        b = 0.1 * jax.random.normal(kb, (n,), jnp.float32)
        m = 0.1 * jax.random.normal(km, (n,), jnp.float32)
        v = jnp.abs(1.0 + 0.1 * jax.random.normal(kv, (n,), jnp.float32))
        return g, b, m, v

    bn1 = bn(ks[8], ks[9], ks[10], ks[11], H1)
    bn2 = bn(ks[12], ks[13], ks[14], ks[15], H2)
    bn3 = bn(ks[16], ks[17], ks[18], ks[19], H3)

    return {
        "w1": w1, "b1": b1, "w2": w2, "b2": b2,
        "w3": w3, "b3": b3, "w4": w4, "b4": b4,
        "bn1_g": bn1[0], "bn1_b": bn1[1], "bn1_m": bn1[2], "bn1_v": bn1[3],
        "bn2_g": bn2[0], "bn2_b": bn2[1], "bn2_m": bn2[2], "bn2_v": bn2[3],
        "bn3_g": bn3[0], "bn3_b": bn3[1], "bn3_m": bn3[2], "bn3_v": bn3[3],
    }


if __name__ == "__main__":
    key = jax.random.PRNGKey(0)
    k_x, k_p = jax.random.split(key)

    params = init_params(k_p)
    prep = jax.tree_util.tree_map(jax.block_until_ready, prepare_params(params))

    # Small primary test (B=2, single grid step).
    B = 2
    x = jax.random.normal(k_x, (B, 130, 13), jnp.float32)
    out = jax.block_until_ready(audio_classification_forward(x, prep))
    assert out.shape == (B, N_CLASSES)

    ref_bf16 = reference_forward_prepared(x, prep)
    err = jnp.max(jnp.abs(out - ref_bf16))
    assert jnp.allclose(out, ref_bf16, atol=1e-2, rtol=1e-2), f"bf16 ref err {err}"

    ref_f32 = reference_forward_f32(x, params)
    err32 = jnp.max(jnp.abs(out - ref_f32))
    assert jnp.allclose(out, ref_f32, atol=5e-2, rtol=5e-2), f"f32 ref err {err32}"

    # Secondary test exercising multi-step grid + batch padding (B=24 -> tb=16, grid=2).
    B2 = 24
    x2 = jax.random.normal(jax.random.PRNGKey(1), (B2, 130, 13), jnp.float32)
    out2 = jax.block_until_ready(audio_classification_forward(x2, prep))
    ref2 = reference_forward_prepared(x2, prep)
    assert out2.shape == (B2, N_CLASSES)
    assert jnp.allclose(out2, ref2, atol=1e-2, rtol=1e-2), \
        f"multi-tile err {jnp.max(jnp.abs(out2 - ref2))}"

    print("KERNEL_OK")
</pallas_src>

<mosaic_0001>
module attributes {stable_mosaic.version = 11 : i64} {
  func.func @_mlp_kernel(%arg0: i32, %arg1: memref<8x1690xf32, #tpu.memory_space<vmem>>, %arg2: memref<1690x512xbf16, #tpu.memory_space<vmem>>, %arg3: memref<1x512xf32, #tpu.memory_space<vmem>>, %arg4: memref<512x256xbf16, #tpu.memory_space<vmem>>, %arg5: memref<1x256xf32, #tpu.memory_space<vmem>>, %arg6: memref<256x128xbf16, #tpu.memory_space<vmem>>, %arg7: memref<1x128xf32, #tpu.memory_space<vmem>>, %arg8: memref<128x128xbf16, #tpu.memory_space<vmem>>, %arg9: memref<1x128xf32, #tpu.memory_space<vmem>>, %arg10: memref<8x128xbf16, #tpu.memory_space<vmem>>) attributes {dimension_semantics = [#tpu.dimension_semantics<parallel>], iteration_bounds = array<i64: 1>, scalar_prefetch = 0 : i64, scratch_operands = 0 : i64, tpu.core_type = #tpu.core_type<tc>, window_params = [{transform_indices = @transform_0, window_bounds = array<i64: 8, 1690>}, {pipeline_mode = #tpu.pipeline_mode<synchronous>, transform_indices = @transform_1, window_bounds = array<i64: 1690, 512>}, {pipeline_mode = #tpu.pipeline_mode<synchronous>, transform_indices = @transform_2, window_bounds = array<i64: 1, 512>}, {pipeline_mode = #tpu.pipeline_mode<synchronous>, transform_indices = @transform_3, window_bounds = array<i64: 512, 256>}, {pipeline_mode = #tpu.pipeline_mode<synchronous>, transform_indices = @transform_4, window_bounds = array<i64: 1, 256>}, {pipeline_mode = #tpu.pipeline_mode<synchronous>, transform_indices = @transform_5, window_bounds = array<i64: 256, 128>}, {pipeline_mode = #tpu.pipeline_mode<synchronous>, transform_indices = @transform_6, window_bounds = array<i64: 1, 128>}, {pipeline_mode = #tpu.pipeline_mode<synchronous>, transform_indices = @transform_7, window_bounds = array<i64: 128, 128>}, {pipeline_mode = #tpu.pipeline_mode<synchronous>, transform_indices = @transform_8, window_bounds = array<i64: 1, 128>}, {transform_indices = @transform_9, window_bounds = array<i64: 8, 128>}]} {
    %c0 = arith.constant 0 : index
    %c0_0 = arith.constant 0 : index
    %0 = vector.load %arg1[%c0, %c0_0] : memref<8x1690xf32, #tpu.memory_space<vmem>>, vector<8x1690xf32>
    %1 = arith.truncf %0 : vector<8x1690xf32> to vector<8x1690xbf16>
    %c0_1 = arith.constant 0 : index
    %c0_2 = arith.constant 0 : index
    %2 = vector.load %arg2[%c0_1, %c0_2] : memref<1690x512xbf16, #tpu.memory_space<vmem>>, vector<1690x512xbf16>
    %cst = arith.constant dense<0.000000e+00> : vector<8x512xf32>
    %3 = tpu.matmul %1, %2, %cst {dimension_numbers = #tpu.dot_dimension_numbers<[1], [0], [0], [1], [0, 0, 1, 1], [], []>} : vector<8x1690xbf16>, vector<1690x512xbf16>, vector<8x512xf32> -> vector<8x512xf32>
    %c0_3 = arith.constant 0 : index
    %c0_4 = arith.constant 0 : index
    %4 = vector.load %arg3[%c0_3, %c0_4] : memref<1x512xf32, #tpu.memory_space<vmem>>, vector<1x512xf32>
    %5 = vector.broadcast %4 : vector<1x512xf32> to vector<8x512xf32>
    %6 = arith.addf %3, %5 : vector<8x512xf32>
    %7 = arith.truncf %6 : vector<8x512xf32> to vector<8x512xbf16>
    %cst_5 = arith.constant 0.000000e+00 : bf16
    %8 = vector.broadcast %cst_5 : bf16 to vector<8x512xbf16>
    %9 = arith.maximumf %7, %8 : vector<8x512xbf16>
    %c0_6 = arith.constant 0 : index
    %c0_7 = arith.constant 0 : index
    %10 = vector.load %arg4[%c0_6, %c0_7] : memref<512x256xbf16, #tpu.memory_space<vmem>>, vector<512x256xbf16>
    %cst_8 = arith.constant dense<0.000000e+00> : vector<8x256xf32>
    %11 = tpu.matmul %9, %10, %cst_8 {dimension_numbers = #tpu.dot_dimension_numbers<[1], [0], [0], [1], [0, 0, 1, 1], [], []>} : vector<8x512xbf16>, vector<512x256xbf16>, vector<8x256xf32> -> vector<8x256xf32>
    %c0_9 = arith.constant 0 : index
    %c0_10 = arith.constant 0 : index
    %12 = vector.load %arg5[%c0_9, %c0_10] : memref<1x256xf32, #tpu.memory_space<vmem>>, vector<1x256xf32>
    %13 = vector.broadcast %12 : vector<1x256xf32> to vector<8x256xf32>
    %14 = arith.addf %11, %13 : vector<8x256xf32>
    %15 = arith.truncf %14 : vector<8x256xf32> to vector<8x256xbf16>
    %cst_11 = arith.constant 0.000000e+00 : bf16
    %16 = vector.broadcast %cst_11 : bf16 to vector<8x256xbf16>
    %17 = arith.maximumf %15, %16 : vector<8x256xbf16>
    %c0_12 = arith.constant 0 : index
    %c0_13 = arith.constant 0 : index
    %18 = vector.load %arg6[%c0_12, %c0_13] : memref<256x128xbf16, #tpu.memory_space<vmem>>, vector<256x128xbf16>
    %cst_14 = arith.constant dense<0.000000e+00> : vector<8x128xf32>
    %19 = tpu.matmul %17, %18, %cst_14 {dimension_numbers = #tpu.dot_dimension_numbers<[1], [0], [0], [1], [0, 0, 1, 1], [], []>} : vector<8x256xbf16>, vector<256x128xbf16>, vector<8x128xf32> -> vector<8x128xf32>
    %c0_15 = arith.constant 0 : index
    %c0_16 = arith.constant 0 : index
    %20 = vector.load %arg7[%c0_15, %c0_16] : memref<1x128xf32, #tpu.memory_space<vmem>>, vector<1x128xf32>
    %21 = vector.broadcast %20 : vector<1x128xf32> to vector<8x128xf32>
    %22 = arith.addf %19, %21 : vector<8x128xf32>
    %23 = arith.truncf %22 : vector<8x128xf32> to vector<8x128xbf16>
    %cst_17 = arith.constant 0.000000e+00 : bf16
    %24 = vector.broadcast %cst_17 : bf16 to vector<8x128xbf16>
    %25 = arith.maximumf %23, %24 : vector<8x128xbf16>
    %c0_18 = arith.constant 0 : index
    %c0_19 = arith.constant 0 : index
    %26 = vector.load %arg8[%c0_18, %c0_19] : memref<128x128xbf16, #tpu.memory_space<vmem>>, vector<128x128xbf16>
    %cst_20 = arith.constant dense<0.000000e+00> : vector<8x128xf32>
    %27 = tpu.matmul %25, %26, %cst_20 {dimension_numbers = #tpu.dot_dimension_numbers<[1], [0], [0], [1], [0, 0, 1, 1], [], []>} : vector<8x128xbf16>, vector<128x128xbf16>, vector<8x128xf32> -> vector<8x128xf32>
    %c0_21 = arith.constant 0 : index
    %c0_22 = arith.constant 0 : index
    %28 = vector.load %arg9[%c0_21, %c0_22] : memref<1x128xf32, #tpu.memory_space<vmem>>, vector<1x128xf32>
    %29 = vector.broadcast %28 : vector<1x128xf32> to vector<8x128xf32>
    %30 = arith.addf %27, %29 : vector<8x128xf32>
    %31 = arith.truncf %30 : vector<8x128xf32> to vector<8x128xbf16>
    %c0_23 = arith.constant 0 : index
    %c0_24 = arith.constant 0 : index
    %32 = vector.load %arg10[%c0_23, %c0_24] : memref<8x128xbf16, #tpu.memory_space<vmem>>, vector<8x128xbf16>
    tpu.vector_store %arg10[%c0_23, %c0_24], %31 {strides = array<i32>} : memref<8x128xbf16, #tpu.memory_space<vmem>>, vector<8x128xbf16>,
    return
  }
  func.func @transform_0(%arg0: i32) -> (i32, i32) {
    %c0_i32 = arith.constant 0 : i32
    %c0_i32_0 = arith.constant 0 : i32
    return %arg0, %c0_i32 : i32, i32
  }
  func.func @transform_1(%arg0: i32) -> (i32, i32) {
    %c0_i32 = arith.constant 0 : i32
    %c0_i32_0 = arith.constant 0 : i32
    %c0_i32_1 = arith.constant 0 : i32
    return %c0_i32, %c0_i32_0 : i32, i32
  }
  func.func @transform_2(%arg0: i32) -> (i32, i32) {
    %c0_i32 = arith.constant 0 : i32
    %c0_i32_0 = arith.constant 0 : i32
    %c0_i32_1 = arith.constant 0 : i32
    return %c0_i32, %c0_i32_0 : i32, i32
  }
  func.func @transform_3(%arg0: i32) -> (i32, i32) {
    %c0_i32 = arith.constant 0 : i32
    %c0_i32_0 = arith.constant 0 : i32
    %c0_i32_1 = arith.constant 0 : i32
    return %c0_i32, %c0_i32_0 : i32, i32
  }
  func.func @transform_4(%arg0: i32) -> (i32, i32) {
    %c0_i32 = arith.constant 0 : i32
    %c0_i32_0 = arith.constant 0 : i32
    %c0_i32_1 = arith.constant 0 : i32
    return %c0_i32, %c0_i32_0 : i32, i32
  }
  func.func @transform_5(%arg0: i32) -> (i32, i32) {
    %c0_i32 = arith.constant 0 : i32
    %c0_i32_0 = arith.constant 0 : i32
    %c0_i32_1 = arith.constant 0 : i32
    return %c0_i32, %c0_i32_0 : i32, i32
  }
  func.func @transform_6(%arg0: i32) -> (i32, i32) {
    %c0_i32 = arith.constant 0 : i32
    %c0_i32_0 = arith.constant 0 : i32
    %c0_i32_1 = arith.constant 0 : i32
    return %c0_i32, %c0_i32_0 : i32, i32
  }
  func.func @transform_7(%arg0: i32) -> (i32, i32) {
    %c0_i32 = arith.constant 0 : i32
    %c0_i32_0 = arith.constant 0 : i32
    %c0_i32_1 = arith.constant 0 : i32
    return %c0_i32, %c0_i32_0 : i32, i32
  }
  func.func @transform_8(%arg0: i32) -> (i32, i32) {
    %c0_i32 = arith.constant 0 : i32
    %c0_i32_0 = arith.constant 0 : i32
    %c0_i32_1 = arith.constant 0 : i32
    return %c0_i32, %c0_i32_0 : i32, i32
  }
  func.func @transform_9(%arg0: i32) -> (i32, i32) {
    %c0_i32 = arith.constant 0 : i32
    %c0_i32_0 = arith.constant 0 : i32
    return %arg0, %c0_i32 : i32, i32
  }
}

</mosaic_0001>

<bundles_post_ra>
// kernel: audio_classification_forward.1
= control target key start
LH: loop header
LB: loop body
LE: loop exit
PB: predicated region body
PF: predicated region fallthrough
CT: control target
= control target key end

     0   :  { %14 = vsyncpa [#allocation3], 0  ;;  %s5990_s0 = inlined_call_operand.vmem [shape: f32[8,1690], index: 0, kind: input, shape index: {}]   ;;  %s5991_s1 = inlined_call_operand.hbm [shape: bf16[1690,512], index: 1, kind: input, shape index: {}]   ;;  %s5992_s2 = inlined_call_operand.hbm [shape: f32[1,512], index: 2, kind: input, shape index: {}]   ;;  %s5993_s3 = inlined_call_operand.hbm [shape: bf16[512,256], index: 3, kind: input, shape index: {}]   ;;  %s5994_s4 = inlined_call_operand.hbm [shape: f32[1,256], index: 4, kind: input, shape index: {}]   ;;  %s5995_s5 = inlined_call_operand.hbm [shape: bf16[256,128], index: 5, kind: input, shape index: {}]   ;;  %s5996_s6 = inlined_call_operand.hbm [shape: f32[1,128], index: 6, kind: input, shape index: {}]   ;;  %s5997_s7 = inlined_call_operand.hbm [shape: bf16[128,128], index: 7, kind: input, shape index: {}]   ;;  %s5998_s8 = inlined_call_operand.hbm [shape: f32[1,128], index: 8, kind: input, shape index: {}]   ;;  %s5999_s9 = inlined_call_operand.vmem [shape: bf16[8,128], index: 9, kind: output, shape index: {}]  }
   0x1   :  { %15 = vsyncpa [#allocation5], 0 }
   0x2   :  { %16 = vsyncpa [#allocation8], 0 }
   0x3   :  { %17 = vsyncpa [#allocation11], 0 }
   0x4   :  { %18 = vsyncpa [#allocation14], 0  ;;  %s5688_s30 = smov [#allocation4]   ;;  %s5689_s11 = smov [#allocation7]  }
   0x5   :  { %s39_s10 = sshll.u32 %s5688_s30, 4  ;;  %s61_s12 = sshll.u32 %s5689_s11, 4  ;;  %s40_s10 = int_to_ptr.vmem [resolvable:$true] %s39_s10  ;;  %s62_s12 = int_to_ptr.vmem [resolvable:$true] %s61_s12 }
   0x6   :  { %s5502_s15 = scalar_lea.hbm %s5992_s2, 64 }
   0x7   :  { %p5503_p0 = scmp.ne.s32.totalorder %s5992_s2, %s5502_s15  ;;  %p5506_p1 = scmp.lt.u32.totalorder %s5502_s15, %s5992_s2 }
   0x9   :  { %p5508_p2 = pnand %p5506_p1, %p5503_p0 }
   0xb   :  { %5511 = shalt.err (!%p5508_p2)
}
   0xc   :  { %s5512_s20 = scalar_lea.vmem %s40_s10, 64  ;;  %p5517_p4 = scmp.lt.s32.totalorder %s40_s10, %s40_s10 }
   0xd   :  { %p5513_p3 = scmp.ne.s32.totalorder %s40_s10, %s5512_s20  ;;  %p5518_p5 = scmp.lt.s32.totalorder %s5512_s20, %s5512_s20 }
   0xf   :  { %p5519_p6 = por %p5518_p5, %p5517_p4 }
  0x11   :  { %p5520_p7 = pnand %p5519_p6, %p5513_p3 }
  0x13   :  { %5523 = shalt.err (!%p5520_p7)
}
  0x14   :  { %42 = dma.hbm_to_vmem [thread:$0]  %s5992_s2, 64, %s40_s10, [#allocation5]  }
  0x15   :  { %s5524_s25 = scalar_lea.hbm %s5994_s4, 32 }
  0x16   :  { %p5525_p8 = scmp.ne.s32.totalorder %s5994_s4, %s5524_s25  ;;  %p5528_p9 = scmp.lt.u32.totalorder %s5524_s25, %s5994_s4 }
  0x18   :  { %p5530_p10 = pnand %p5528_p9, %p5525_p8 }
  0x1a   :  { %5533 = shalt.err (!%p5530_p10)
}
  0x1b   :  { %s5534_s30 = scalar_lea.vmem %s62_s12, 32  ;;  %p5539_p12 = scmp.lt.s32.totalorder %s62_s12, %s62_s12 }
  0x1c   :  { %p5535_p11 = scmp.ne.s32.totalorder %s62_s12, %s5534_s30  ;;  %p5540_p13 = scmp.lt.s32.totalorder %s5534_s30, %s5534_s30 }
  0x1e   :  { %p5541_p0 = por %p5540_p13, %p5539_p12 }
  0x20   :  { %p5542_p1 = pnand %p5541_p0, %p5535_p11 }
  0x22   :  { %5545 = shalt.err (!%p5542_p1)
}
  0x23   :  { %64 = dma.hbm_to_vmem [thread:$0]  %s5994_s4, 32, %s62_s12, [#allocation8]  }
  0x24   :  { %s5690_s11 = smov [#allocation10]   ;;  %s5691_s14 = smov [#allocation2]  }
  0x25   :  { %s83_s13 = sshll.u32 %s5690_s11, 4  ;;  %s26_s15 = sshll.u32 %s5691_s14, 4  ;;  %s84_s13 = int_to_ptr.vmem [resolvable:$true] %s83_s13  ;;  %s5779_s15 = int_to_ptr.vmem [resolvable:$true] %s26_s15 }
  0x26   :  { %s5546_s18 = scalar_lea.hbm %s5996_s6, 16 }
  0x27   :  { %p5547_p2 = scmp.ne.s32.totalorder %s5996_s6, %s5546_s18  ;;  %p5550_p3 = scmp.lt.u32.totalorder %s5546_s18, %s5996_s6 }
  0x29   :  { %p5552_p4 = pnand %p5550_p3, %p5547_p2 }
  0x2b   :  { %5555 = shalt.err (!%p5552_p4)
}
  0x2c   :  { %s5556_s4 = scalar_lea.vmem %s84_s13, 16  ;;  %s5560_s12 = scalar_lea.vmem %s84_s13, 32 }
  0x2d   :  { %p5557_p5 = scmp.ne.s32.totalorder %s84_s13, %s5556_s4  ;;  %p5561_p6 = scmp.lt.s32.totalorder %s84_s13, %s84_s13 }
  0x2e   :  { %p5562_p7 = scmp.lt.s32.totalorder %s5560_s12, %s5556_s4 }
  0x30   :  { %p5563_p8 = por %p5562_p7, %p5561_p6 }
  0x32   :  { %p5564_p9 = pnand %p5563_p8, %p5557_p5 }
  0x34   :  { %5567 = shalt.err (!%p5564_p9)
}
  0x35   :  { %86 = dma.hbm_to_vmem [thread:$0]  %s5996_s6, 16, %s84_s13, [#allocation11]  }
  0x36   :  { %s5568_s27 = scalar_lea.hbm %s5991_s1, 54272 }
  0x37   :  { %p5569_p10 = scmp.ne.s32.totalorder %s5991_s1, %s5568_s27  ;;  %p5572_p11 = scmp.lt.u32.totalorder %s5568_s27, %s5991_s1 }
  0x39   :  { %p5574_p12 = pnand %p5572_p11, %p5569_p10 }
  0x3b   :  { %5577 = shalt.err (!%p5574_p12)
}
  0x3c   :  { %s5578_s10 = scalar_lea.vmem %s5779_s15, 54272  ;;  %p5583_p0 = scmp.lt.s32.totalorder %s5779_s15, %s5779_s15 }
  0x3d   :  { %p5579_p13 = scmp.ne.s32.totalorder %s5779_s15, %s5578_s10  ;;  %p5584_p1 = scmp.lt.s32.totalorder %s5578_s10, %s5578_s10 }
  0x3f   :  { %p5585_p2 = por %p5584_p1, %p5583_p0 }
  0x41   :  { %p5586_p3 = pnand %p5585_p2, %p5579_p13 }
  0x43   :  { %5589 = shalt.err (!%p5586_p3)
}
  0x44   :  { %s5692_s6 = smov 256   ;;  %s5693_s11 = smov 16  }
  0x45   :  { %32 = dma.hbm_to_vmem [thread:$0]  %s5991_s1, 54272, %s5779_s15, [#allocation3], %s5692_s6, %s5692_s6, %s5693_s11  }
  0x46   :  { %s5694_s16 = smov [#allocation6]   ;;  %s5590_s20 = scalar_lea.hbm %s5993_s3, 8192 }
  0x47   :  { %s48_s17 = sshll.u32 %s5694_s16, 4  ;;  %p5591_p4 = scmp.ne.s32.totalorder %s5993_s3, %s5590_s20  ;;  %s49_s17 = int_to_ptr.vmem [resolvable:$true] %s48_s17 }
  0x48   :  { %p5594_p5 = scmp.lt.u32.totalorder %s5590_s20, %s5993_s3 }
  0x4a   :  { %p5596_p6 = pnand %p5594_p5, %p5591_p4 }
  0x4c   :  { %5599 = shalt.err (!%p5596_p6)
}
  0x4d   :  { %s5600_s23 = scalar_lea.vmem %s49_s17, 8192  ;;  %p5605_p8 = scmp.lt.s32.totalorder %s49_s17, %s49_s17 }
  0x4e   :  { %p5601_p7 = scmp.ne.s32.totalorder %s49_s17, %s5600_s23  ;;  %p5606_p9 = scmp.lt.s32.totalorder %s5600_s23, %s5600_s23 }
  0x50   :  { %p5607_p10 = por %p5606_p9, %p5605_p8 }
  0x52   :  { %p5608_p11 = pnand %p5607_p10, %p5601_p7 }
  0x54   :  { %5611 = shalt.err (!%p5608_p11)
}
  0x55   :  { %s5695_s1 = smov 128   ;;  %s5696_s15 = smov 8  }
  0x56   :  { %54 = dma.hbm_to_vmem [thread:$0]  %s5993_s3, 8192, %s49_s17, [#allocation5], %s5695_s1, %s5695_s1, %s5696_s15  }
  0x57   :  { %s5697_s26 = smov [#allocation9]   ;;  %s5612_s30 = scalar_lea.hbm %s5995_s5, 2048 }
  0x58   :  { %s70_s27 = sshll.u32 %s5697_s26, 4  ;;  %p5613_p12 = scmp.ne.s32.totalorder %s5995_s5, %s5612_s30  ;;  %s71_s27 = int_to_ptr.vmem [resolvable:$true] %s70_s27 }
  0x59   :  { %p5616_p13 = scmp.lt.u32.totalorder %s5612_s30, %s5995_s5 }
  0x5b   :  { %p5618_p0 = pnand %p5616_p13, %p5613_p12 }
  0x5d   :  { %5621 = shalt.err (!%p5618_p0)
}
  0x5e   :  { %s5622_s13 = scalar_lea.vmem %s71_s27, 2048  ;;  %p5627_p2 = scmp.lt.s32.totalorder %s71_s27, %s71_s27 }
  0x5f   :  { %p5623_p1 = scmp.ne.s32.totalorder %s71_s27, %s5622_s13  ;;  %p5628_p3 = scmp.lt.s32.totalorder %s5622_s13, %s5622_s13 }
  0x61   :  { %p5629_p4 = por %p5628_p3, %p5627_p2 }
  0x63   :  { %p5630_p5 = pnand %p5629_p4, %p5623_p1 }
  0x65   :  { %5633 = shalt.err (!%p5630_p5)
}
  0x66   :  { %s5698_s3 = smov 64   ;;  %s5699_s14 = smov 4  }
  0x67   :  { %76 = dma.hbm_to_vmem [thread:$0]  %s5995_s5, 2048, %s71_s27, [#allocation8], %s5698_s3, %s5698_s3, %s5699_s14  }
  0x68   :  { %s5700_s18 = smov [#allocation12]   ;;  %s5701_s20 = smov [#allocation13]  }
  0x69   :  { %s92_s19 = sshll.u32 %s5700_s18, 4  ;;  %s105_s21 = sshll.u32 %s5701_s20, 4  ;;  %s93_s19 = int_to_ptr.vmem [resolvable:$true] %s92_s19  ;;  %s106_s21 = int_to_ptr.vmem [resolvable:$true] %s105_s21 }
  0x6a   :  { %s5634_s12 = scalar_lea.hbm %s5997_s7, 1024 }
  0x6b   :  { %p5635_p6 = scmp.ne.s32.totalorder %s5997_s7, %s5634_s12  ;;  %p5638_p7 = scmp.lt.u32.totalorder %s5634_s12, %s5997_s7 }
  0x6d   :  { %p5640_p8 = pnand %p5638_p7, %p5635_p6 }
  0x6f   :  { %5643 = shalt.err (!%p5640_p8)
}
  0x70   :  { %s5644_s5 = scalar_lea.vmem %s93_s19, 1024  ;;  %p5649_p10 = scmp.lt.s32.totalorder %s93_s19, %s93_s19 }
  0x71   :  { %p5645_p9 = scmp.ne.s32.totalorder %s93_s19, %s5644_s5  ;;  %p5650_p11 = scmp.lt.s32.totalorder %s5644_s5, %s5644_s5 }
  0x73   :  { %p5651_p12 = por %p5650_p11, %p5649_p10 }
  0x75   :  { %p5652_p13 = pnand %p5651_p12, %p5645_p9 }
  0x77   :  { %5655 = shalt.err (!%p5652_p13)
}
  0x78   :  { %98 = dma.hbm_to_vmem [thread:$0]  %s5997_s7, 1024, %s93_s19, [#allocation11], %s5698_s3, %s5698_s3, %s5699_s14  }
  0x79   :  { %s5656_s29 = scalar_lea.hbm %s5998_s8, 16 }
  0x7a   :  { %p5657_p0 = scmp.ne.s32.totalorder %s5998_s8, %s5656_s29  ;;  %p5660_p1 = scmp.lt.u32.totalorder %s5656_s29, %s5998_s8 }
  0x7c   :  { %p5662_p2 = pnand %p5660_p1, %p5657_p0 }
  0x7e   :  { %5665 = shalt.err (!%p5662_p2)
}
  0x7f   :  { %s5666_s11 = scalar_lea.vmem %s106_s21, 16  ;;  %s5670_s13 = scalar_lea.vmem %s106_s21, 32 }
  0x80   :  { %p5667_p3 = scmp.ne.s32.totalorder %s106_s21, %s5666_s11  ;;  %p5671_p4 = scmp.lt.s32.totalorder %s106_s21, %s106_s21 }
  0x81   :  { %p5672_p5 = scmp.lt.s32.totalorder %s5670_s13, %s5666_s11 }
  0x83   :  { %p5673_p6 = por %p5672_p5, %p5671_p4 }
  0x85   :  { %p5674_p7 = pnand %p5673_p6, %p5667_p3 }
  0x87   :  { %5677 = shalt.err (!%p5674_p7)
}
  0x88   :  { %108 = dma.hbm_to_vmem [thread:$0]  %s5998_s8, 16, %s106_s21, [#allocation14]  }
  0x89   :  { %5678 = dma.done.wait [#allocation3], 54272  }
  0x8a   :  { %5679 = vsyncadd [#allocation3], 4294913024 }
  0x8b   :  { %5680 = dma.done.wait [#allocation5], 8256  }
  0x8c   :  { %5681 = vsyncadd [#allocation5], 4294959040 }
  0x8d   :  { %5682 = dma.done.wait [#allocation8], 2080  }
  0x8e   :  { %5683 = vsyncadd [#allocation8], 4294965216 }
  0x8f   :  { %5684 = dma.done.wait [#allocation11], 1040  }
  0x90   :  { %5685 = vsyncadd [#allocation11], 4294966256 }
  0x91   :  { %5686 = dma.done.wait [#allocation14], 16  }
  0x92   :  { %5687 = vsyncadd [#allocation14], 4294967280  ;;  %v4746_v0 = vld [vmem:[#allocation2 + $0x4] ss:$16 sps:$4 sm:$0xff]   ;;  %v4750_v2 = vld [vmem:[#allocation2] ss:$16 sps:$4 sm:$0xff]  }
  0x93   :  { %v4748_v1 = vld [vmem:[#allocation2 + $0xc04] ss:$16 sps:$4 sm:$0xff]   ;;  %2741 = vmatprep.subr.bf16.mxu0 %v4746_v0  ;;  %v4751_v3 = vld [vmem:[#allocation2 + $0xc00] ss:$16 sps:$4 sm:$0xff]   ;;  %v147_v30 = vld [vmem:[%s5990_s0 + $0x68] sm:$0xff]  ;;  %vm2724_vm0 = vcmask 211968  }
  0x94   :  { %2987 = vmatprep.subr.bf16.mxu1 %v4748_v1  ;;  %v4752_v4 = vld [vmem:[#allocation2 + $0x24] ss:$16 sps:$4 sm:$0xff]   ;;  %2742 = vmatpush1.bf16.msra.mxu0 %v4750_v2  ;;  %v4756_v6 = vld [vmem:[#allocation2 + $0x20] ss:$16 sps:$4 sm:$0xff]   ;;  %v5861_v32 = vpack.c.bf16 %v147_v30, %v147_v30  ;;  %vm2728_vm1 = vcmask 1044480   ;;  %v135_v52 = vld [vmem:[%s5990_s0 + $0x8] sm:$0xff] }
  0x95   :  { %2988 = vmatpush1.bf16.msra.mxu1 %v4751_v3  ;;  %v4754_v5 = vld [vmem:[#allocation2 + $0xc24] ss:$16 sps:$4 sm:$0xff]   ;;  %2743 = vmatprep.subr.bf16.mxu0 %v4752_v4  ;;  %v4757_v7 = vld [vmem:[#allocation2 + $0xc20] ss:$16 sps:$4 sm:$0xff]   ;;  %v4810_v45 = vld [vmem:[#allocation2 + $0xc] ss:$16 sps:$4 sm:$0xff]   ;;  %v149_v55 = vpack.c.bf16 %v135_v52, %v135_v52 }
  0x96   :  { %2989 = vmatprep.subr.bf16.mxu1 %v4754_v5  ;;  %v4758_v8 = vld [vmem:[#allocation2 + $0x44] ss:$16 sps:$4 sm:$0xff]   ;;  %v4762_v10 = vld [vmem:[#allocation2 + $0x40] ss:$16 sps:$4 sm:$0xff]   ;;  %4529 = vmatprep.mubr.msk.bf16.mxu1 %vm2724_vm0, %v5861_v32  ;;  %v4808_v47 = vld [vmem:[#allocation2 + $0x8] ss:$16 sps:$4 sm:$0xff]  }
  0x97   :  { %v4760_v9 = vld [vmem:[#allocation2 + $0xc44] ss:$16 sps:$4 sm:$0xff]   ;;  %v4763_v11 = vld [vmem:[#allocation2 + $0xc40] ss:$16 sps:$4 sm:$0xff]   ;;  %v4816_v50 = vld [vmem:[#allocation2 + $0x2c] ss:$16 sps:$4 sm:$0xff]   ;;  %2773 = vmatprep.mubr.bf16.mxu0 %v149_v55 }
  0x98   :  { %2744 = vmatpush1.bf16.msra.mxu0 %v4756_v6  ;;  %v4764_v12 = vld [vmem:[#allocation2 + $0x64] ss:$16 sps:$4 sm:$0xff]   ;;  %v4768_v14 = vld [vmem:[#allocation2 + $0x60] ss:$16 sps:$4 sm:$0xff]   ;;  %v4814_v51 = vld [vmem:[#allocation2 + $0x28] ss:$16 sps:$4 sm:$0xff]  }
  0x99   :  { %2990 = vmatpush1.bf16.msra.mxu1 %v4757_v7  ;;  %2745 = vmatprep.subr.bf16.mxu0 %v4758_v8  ;;  %v4766_v13 = vld [vmem:[#allocation2 + $0xc64] ss:$16 sps:$4 sm:$0xff]   ;;  %v4769_v15 = vld [vmem:[#allocation2 + $0xc60] ss:$16 sps:$4 sm:$0xff]   ;;  %v4822_v56 = vld [vmem:[#allocation2 + $0x4c] ss:$16 sps:$4 sm:$0xff]  }
  0x9a   :  { %2991 = vmatprep.subr.bf16.mxu1 %v4760_v9  ;;  %v4770_v16 = vld [vmem:[#allocation2 + $0x84] ss:$16 sps:$4 sm:$0xff]   ;;  %v4774_v18 = vld [vmem:[#allocation2 + $0x80] ss:$16 sps:$4 sm:$0xff]   ;;  %v4820_v57 = vld [vmem:[#allocation2 + $0x48] ss:$16 sps:$4 sm:$0xff]  }
  0x9b   :  { %v4772_v17 = vld [vmem:[#allocation2 + $0xc84] ss:$16 sps:$4 sm:$0xff]   ;;  %v4775_v19 = vld [vmem:[#allocation2 + $0xc80] ss:$16 sps:$4 sm:$0xff]   ;;  %v4828_v60 = vld [vmem:[#allocation2 + $0x6c] ss:$16 sps:$4 sm:$0xff]  }
  0x9c   :  { %2746 = vmatpush1.bf16.msra.mxu0 %v4762_v10  ;;  %v4776_v20 = vld [vmem:[#allocation2 + $0xa4] ss:$16 sps:$4 sm:$0xff]   ;;  %v4780_v22 = vld [vmem:[#allocation2 + $0xa0] ss:$16 sps:$4 sm:$0xff]   ;;  %v4826_v61 = vld [vmem:[#allocation2 + $0x68] ss:$16 sps:$4 sm:$0xff]  }
  0x9d   :  { %2992 = vmatpush1.bf16.msra.mxu1 %v4763_v11  ;;  %2747 = vmatprep.subr.bf16.mxu0 %v4764_v12  ;;  %v4778_v21 = vld [vmem:[#allocation2 + $0xca4] ss:$16 sps:$4 sm:$0xff]   ;;  %v4781_v23 = vld [vmem:[#allocation2 + $0xca0] ss:$16 sps:$4 sm:$0xff]   ;;  %v4834_v0 = vld [vmem:[#allocation2 + $0x8c] ss:$16 sps:$4 sm:$0xff]  }
  0x9e   :  { %2993 = vmatprep.subr.bf16.mxu1 %v4766_v13  ;;  %v4782_v24 = vld [vmem:[#allocation2 + $0xc4] ss:$16 sps:$4 sm:$0xff]   ;;  %v4786_v26 = vld [vmem:[#allocation2 + $0xc0] ss:$16 sps:$4 sm:$0xff]   ;;  %v4832_v1 = vld [vmem:[#allocation2 + $0x88] ss:$16 sps:$4 sm:$0xff]  }
  0x9f   :  { %v4784_v25 = vld [vmem:[#allocation2 + $0xcc4] ss:$16 sps:$4 sm:$0xff]   ;;  %v4787_v27 = vld [vmem:[#allocation2 + $0xcc0] ss:$16 sps:$4 sm:$0xff]   ;;  %v4840_v4 = vld [vmem:[#allocation2 + $0xac] ss:$16 sps:$4 sm:$0xff]  }
  0xa0   :  { %2748 = vmatpush1.bf16.msra.mxu0 %v4768_v14  ;;  %v4788_v28 = vld [vmem:[#allocation2 + $0xe4] ss:$16 sps:$4 sm:$0xff]   ;;  %v4792_v31 = vld [vmem:[#allocation2 + $0xe0] ss:$16 sps:$4 sm:$0xff]   ;;  %v4838_v5 = vld [vmem:[#allocation2 + $0xa8] ss:$16 sps:$4 sm:$0xff]  }
  0xa1   :  { %2994 = vmatpush1.bf16.msra.mxu1 %v4769_v15  ;;  %2749 = vmatprep.subr.bf16.mxu0 %v4770_v16  ;;  %v4790_v29 = vld [vmem:[#allocation2 + $0xce4] ss:$16 sps:$4 sm:$0xff]   ;;  %v4793_v33 = vld [vmem:[#allocation2 + $0xce0] ss:$16 sps:$4 sm:$0xff]   ;;  %v4847_v9 = vld [vmem:[#allocation2 + $0xcc] ss:$16 sps:$4 sm:$0xff]  }
  0xa2   :  { %2995 = vmatprep.subr.bf16.mxu1 %v4772_v17  ;;  %v4794_v34 = vld [vmem:[#allocation2 + $0x104] ss:$16 sps:$4 sm:$0xff]   ;;  %v4798_v36 = vld [vmem:[#allocation2 + $0x100] ss:$16 sps:$4 sm:$0xff]   ;;  %v4845_v11 = vld [vmem:[#allocation2 + $0xc8] ss:$16 sps:$4 sm:$0xff]  }
  0xa3   :  { %v4796_v35 = vld [vmem:[#allocation2 + $0xd04] ss:$16 sps:$4 sm:$0xff]   ;;  %v4799_v37 = vld [vmem:[#allocation2 + $0xd00] ss:$16 sps:$4 sm:$0xff]   ;;  %v4853_v14 = vld [vmem:[#allocation2 + $0xec] ss:$16 sps:$4 sm:$0xff]  }
  0xa4   :  { %2750 = vmatpush1.bf16.msra.mxu0 %v4774_v18  ;;  %v4800_v38 = vld [vmem:[#allocation2 + $0x124] ss:$16 sps:$4 sm:$0xff]   ;;  %v4805_v40 = vld [vmem:[#allocation2 + $0xd20] ss:$16 sps:$4 sm:$0x1f]   ;;  %vm5704_vm2 = vmmov 0  }
  0xa5   :  { %2996 = vmatpush1.bf16.msra.mxu1 %v4775_v19  ;;  %2751 = vmatprep.subr.bf16.mxu0 %v4776_v20  ;;  %v4802_v39 = vld [vmem:[#allocation2 + $0xd24] ss:$16 sps:$4 sm:$0x1f]   ;;  %v4804_v41 = vld [vmem:[#allocation2 + $0x120] ss:$16 sps:$4 sm:$0xff]   ;;  %v2730_v43 = vsel %vm2728_vm1, %v4805_v40, 0 }
  0xa6   :  { %2997 = vmatprep.subr.bf16.mxu1 %v4778_v21  ;;  %v146_v42 = vld [vmem:[%s5990_s0 + $0x60] sm:$0xff]  ;;  %v4851_v16 = vld [vmem:[#allocation2 + $0xe8] ss:$16 sps:$4 sm:$0xff]   ;;  %v4859_v18 = vld [vmem:[#allocation2 + $0x10c] ss:$16 sps:$4 sm:$0xff]  }
  0xa7   :  { %v4806_v44 = vld [vmem:[#allocation2 + $0x144] ss:$16 sps:$4 sm:$0xff]   ;;  %v5870_v46 = vpack.c.bf16 %v146_v42, %v146_v42  ;;  %v4811_v48 = vld [vmem:[#allocation2 + $0x140] ss:$16 sps:$4 sm:$0xff]   ;;  %v4857_v20 = vld [vmem:[#allocation2 + $0x108] ss:$16 sps:$4 sm:$0xff]  }
  0xa8   :  { %2752 = vmatpush1.bf16.msra.mxu0 %v4780_v22  ;;  %v4812_v49 = vld [vmem:[#allocation2 + $0x164] ss:$16 sps:$4 sm:$0xff]   ;;  %v4817_v53 = vld [vmem:[#allocation2 + $0x160] ss:$16 sps:$4 sm:$0xff]   ;;  %v4865_v22 = vld [vmem:[#allocation2 + $0x12c] ss:$16 sps:$4 sm:$0xff]  }
  0xa9   :  { %2998 = vmatpush1.bf16.msra.mxu1 %v4781_v23  ;;  %2753 = vmatprep.subr.bf16.mxu0 %v4782_v24  ;;  %v4818_v54 = vld [vmem:[#allocation2 + $0x184] ss:$16 sps:$4 sm:$0xff]   ;;  %v4823_v58 = vld [vmem:[#allocation2 + $0x180] ss:$16 sps:$4 sm:$0xff]   ;;  %v4863_v24 = vld [vmem:[#allocation2 + $0x128] ss:$16 sps:$4 sm:$0xff]  }
  0xaa   :  { %2999 = vmatprep.subr.bf16.mxu1 %v4784_v25  ;;  %v4824_v59 = vld [vmem:[#allocation2 + $0x1a4] ss:$16 sps:$4 sm:$0xff]   ;;  %v4829_v62 = vld [vmem:[#allocation2 + $0x1a0] ss:$16 sps:$4 sm:$0xff]   ;;  %v4877_v30 = vld [vmem:[#allocation2 + $0x16c] ss:$16 sps:$4 sm:$0xff]  }
  0xab   :  { %v4830_v63 = vld [vmem:[#allocation2 + $0x1c4] ss:$16 sps:$4 sm:$0xff]   ;;  %v4835_v2 = vld [vmem:[#allocation2 + $0x1c0] ss:$16 sps:$4 sm:$0xff]   ;;  %v4899_v52 = vld [vmem:[#allocation2 + $0x1e8] ss:$16 sps:$4 sm:$0xff]  }
  0xac   :  { %2754 = vmatpush1.bf16.msra.mxu0 %v4786_v26  ;;  %v4836_v3 = vld [vmem:[#allocation2 + $0x1e4] ss:$16 sps:$4 sm:$0xff]   ;;  %v4841_v6 = vld [vmem:[#allocation2 + $0x1e0] ss:$16 sps:$4 sm:$0xff]   ;;  %v4871_v26 = vld [vmem:[#allocation2 + $0x14c] ss:$16 sps:$4 sm:$0xff]  }
  0xad   :  { %3000 = vmatpush1.bf16.msra.mxu1 %v4787_v27  ;;  %2755 = vmatprep.subr.bf16.mxu0 %v4788_v28  ;;  %v4844_v7 = vld [vmem:[#allocation2 + $0x204] ss:$16 sps:$4 sm:$0xff]   ;;  %v4842_v10 = vld [vmem:[#allocation2 + $0x200] ss:$16 sps:$4 sm:$0xff]   ;;  %v4869_v28 = vld [vmem:[#allocation2 + $0x148] ss:$16 sps:$4 sm:$0xff]  }
  0xae   :  { %3001 = vmatprep.subr.bf16.mxu1 %v4790_v29  ;;  %v134_v8 = vld [vmem:[%s5990_s0] sm:$0xff] }
  0xaf   :  { %v5879_v12 = vpack.c.bf16 %v134_v8, %v134_v8  ;;  %v4850_v13 = vld [vmem:[#allocation2 + $0x224] ss:$16 sps:$4 sm:$0xff]   ;;  %v4848_v15 = vld [vmem:[#allocation2 + $0x220] ss:$16 sps:$4 sm:$0xff]   ;;  %v4929_v8 = vld [vmem:[#allocation2 + $0x288] ss:$16 sps:$4 sm:$0xff]  }
  0xb0   :  { %2756 = vmatpush1.bf16.msra.mxu0 %v4792_v31  ;;  %v4856_v17 = vld [vmem:[#allocation2 + $0x244] ss:$16 sps:$4 sm:$0xff]   ;;  %v4854_v19 = vld [vmem:[#allocation2 + $0x240] ss:$16 sps:$4 sm:$0xff]  }
  0xb1   :  { %3002 = vmatpush1.bf16.msra.mxu1 %v4793_v33  ;;  %2757 = vmatprep.subr.bf16.mxu0 %v4794_v34  ;;  %v4862_v21 = vld [vmem:[#allocation2 + $0x264] ss:$16 sps:$4 sm:$0xff]   ;;  %v4860_v23 = vld [vmem:[#allocation2 + $0x260] ss:$16 sps:$4 sm:$0xff]   ;;  %v4875_v33 = vld [vmem:[#allocation2 + $0x168] ss:$16 sps:$4 sm:$0xff]  }
  0xb2   :  { %3003 = vmatprep.subr.bf16.mxu1 %v4796_v35  ;;  %v4868_v25 = vld [vmem:[#allocation2 + $0x284] ss:$16 sps:$4 sm:$0xff]   ;;  %v4866_v27 = vld [vmem:[#allocation2 + $0x280] ss:$16 sps:$4 sm:$0xff]   ;;  %v4883_v35 = vld [vmem:[#allocation2 + $0x18c] ss:$16 sps:$4 sm:$0xff]  }
  0xb3   :  { %v4874_v29 = vld [vmem:[#allocation2 + $0x2a4] ss:$16 sps:$4 sm:$0xff]   ;;  %v4872_v31 = vld [vmem:[#allocation2 + $0x2a0] ss:$16 sps:$4 sm:$0xff]  }
  0xb4   :  { %2758 = vmatpush1.bf16.msra.mxu0 %v4798_v36  ;;  %v4880_v34 = vld [vmem:[#allocation2 + $0x2c4] ss:$16 sps:$4 sm:$0xff]   ;;  %v137_v36 = vld [vmem:[%s5990_s0 + $0x18] sm:$0xff]  ;;  %v4884_v42 = vld [vmem:[#allocation2 + $0x2e0] ss:$16 sps:$4 sm:$0xff]  }
  0xb5   :  { %3004 = vmatpush1.bf16.msra.mxu1 %v4799_v37  ;;  %2759 = vmatprep.subr.bf16.mxu0 %v4800_v38  ;;  %v4878_v37 = vld [vmem:[#allocation2 + $0x2c0] ss:$16 sps:$4 sm:$0xff]   ;;  %v151_v38 = vpack.c.bf16 %v137_v36, %v137_v36  ;;  %v4886_v40 = vld [vmem:[#allocation2 + $0x2e4] ss:$16 sps:$4 sm:$0xff]  }
  0xb6   :  { %4528 = vmatprep.subr.msk.bf16.mxu1 %vm2728_vm1, %v4802_v39  ;;  %v4881_v39 = vld [vmem:[#allocation2 + $0x188] ss:$16 sps:$4 sm:$0xff]   ;;  %v4962_v36 = vld [vmem:[#allocation2 + $0x480] ss:$16 sps:$4 sm:$0xff]  }
  0xb8   :  { %2760 = vmatpush1.bf16.msra.mxu0 %v4804_v41  ;;  %v4889_v41 = vld [vmem:[#allocation2 + $0x1ac] ss:$16 sps:$4 sm:$0xff]  }
  0xb9   :  { %3006 = vmatpush1.bf16.msra.mxu1 %v2730_v43  ;;  %2761 = vmatprep.subr.bf16.mxu0 %v4806_v44  ;;  %v4887_v43 = vld [vmem:[#allocation2 + $0x1a8] ss:$16 sps:$4 sm:$0xff]   ;;  %v4892_v44 = vld [vmem:[#allocation2 + $0x304] ss:$16 sps:$4 sm:$0xff]  }
  0xba   :  { %3028 = vmatprep.subr.bf16.mxu1 %v4810_v45  ;;  %v4895_v45 = vld [vmem:[#allocation2 + $0x1cc] ss:$16 sps:$4 sm:$0xff]  }
  0xbc   :  { %3020 = vmatmul.mubr.bf16.vlgmr.msra.gmra.mrb[0].mxu1 %v5870_v46  ;;  %2762 = vmatpush1.bf16.msra.mxu0 %v4811_v48  ;;  %v4893_v48 = vld [vmem:[#allocation2 + $0x1c8] ss:$16 sps:$4 sm:$0xff]  }
  0xbd   :  { %3029 = vmatpush1.bf16.msra.mxu1 %v4808_v47  ;;  %2763 = vmatprep.subr.bf16.mxu0 %v4812_v49  ;;  %v4890_v47 = vld [vmem:[#allocation2 + $0x300] ss:$16 sps:$4 sm:$0xff]   ;;  %v4898_v49 = vld [vmem:[#allocation2 + $0x324] ss:$16 sps:$4 sm:$0xff]  }
  0xbe   :  { %3030 = vmatprep.subr.bf16.mxu1 %v4816_v50  ;;  %3060 = vmatprep.mubr.bf16.mxu1 %v149_v55  ;;  %v4901_v50 = vld [vmem:[#allocation2 + $0x1ec] ss:$16 sps:$4 sm:$0xff]   ;;  %v4902_v55 = vld [vmem:[#allocation2 + $0x340] ss:$16 sps:$4 sm:$0xff]  }
  0xc0   :  { %2764 = vmatpush1.bf16.msra.mxu0 %v4817_v53  ;;  %v4904_v53 = vld [vmem:[#allocation2 + $0x344] ss:$16 sps:$4 sm:$0xff]  }
  0xc1   :  { %3031 = vmatpush1.bf16.msra.mxu1 %v4814_v51  ;;  %2765 = vmatprep.subr.bf16.mxu0 %v4818_v54  ;;  %v4896_v51 = vld [vmem:[#allocation2 + $0x320] ss:$16 sps:$4 sm:$0xff]   ;;  %v4907_v54 = vld [vmem:[#allocation2 + $0x20c] ss:$16 sps:$4 sm:$0xff]  }
  0xc2   :  { %3032 = vmatprep.subr.bf16.mxu1 %v4822_v56  ;;  %v4905_v56 = vld [vmem:[#allocation2 + $0x208] ss:$16 sps:$4 sm:$0xff]  }
  0xc4   :  { %2766 = vmatpush1.bf16.msra.mxu0 %v4823_v58  ;;  %v4913_v58 = vld [vmem:[#allocation2 + $0x22c] ss:$16 sps:$4 sm:$0xff]  }
  0xc5   :  { %3033 = vmatpush1.bf16.msra.mxu1 %v4820_v57  ;;  %2767 = vmatprep.subr.bf16.mxu0 %v4824_v59  ;;  %v4910_v57 = vld [vmem:[#allocation2 + $0x364] ss:$16 sps:$4 sm:$0xff]   ;;  %v4908_v59 = vld [vmem:[#allocation2 + $0x360] ss:$16 sps:$4 sm:$0xff]  }
  0xc6   :  { %3034 = vmatprep.subr.bf16.mxu1 %v4828_v60  ;;  %v4911_v60 = vld [vmem:[#allocation2 + $0x228] ss:$16 sps:$4 sm:$0xff]  }
  0xc8   :  { %2768 = vmatpush1.bf16.msra.mxu0 %v4829_v62  ;;  %v4919_v62 = vld [vmem:[#allocation2 + $0x24c] ss:$16 sps:$4 sm:$0xff]  }
  0xc9   :  { %3035 = vmatpush1.bf16.msra.mxu1 %v4826_v61  ;;  %2769 = vmatprep.subr.bf16.mxu0 %v4830_v63  ;;  %v4916_v61 = vld [vmem:[#allocation2 + $0x384] ss:$16 sps:$4 sm:$0xff]   ;;  %v4914_v63 = vld [vmem:[#allocation2 + $0x380] ss:$16 sps:$4 sm:$0xff]  }
  0xca   :  { %3036 = vmatprep.subr.bf16.mxu1 %v4834_v0  ;;  %v4917_v0 = vld [vmem:[#allocation2 + $0x248] ss:$16 sps:$4 sm:$0xff]  }
  0xcc   :  { %2770 = vmatpush1.bf16.msra.mxu0 %v4835_v2  ;;  %v4925_v2 = vld [vmem:[#allocation2 + $0x26c] ss:$16 sps:$4 sm:$0xff]  }
  0xcd   :  { %3037 = vmatpush1.bf16.msra.mxu1 %v4832_v1  ;;  %2771 = vmatprep.subr.bf16.mxu0 %v4836_v3  ;;  %v4922_v1 = vld [vmem:[#allocation2 + $0x3a4] ss:$16 sps:$4 sm:$0xff]   ;;  %v4920_v3 = vld [vmem:[#allocation2 + $0x3a0] ss:$16 sps:$4 sm:$0xff]  }
  0xce   :  { %3038 = vmatprep.subr.bf16.mxu1 %v4840_v4  ;;  %v4923_v4 = vld [vmem:[#allocation2 + $0x268] ss:$16 sps:$4 sm:$0xff]  }
  0xd0   :  { %2772 = vmatpush1.bf16.msra.mxu0 %v4841_v6  ;;  %v4931_v6 = vld [vmem:[#allocation2 + $0x28c] ss:$16 sps:$4 sm:$0xff]  }
  0xd1   :  { %3039 = vmatpush1.bf16.msra.mxu1 %v4838_v5  ;;  %2782 = vmatprep.subr.bf16.mxu0 %v4844_v7  ;;  %v4928_v5 = vld [vmem:[#allocation2 + $0x3c4] ss:$16 sps:$4 sm:$0xff]   ;;  %v4926_v7 = vld [vmem:[#allocation2 + $0x3c0] ss:$16 sps:$4 sm:$0xff]  }
  0xd2   :  { %3040 = vmatprep.subr.bf16.mxu1 %v4847_v9  ;;  %v4934_v9 = vld [vmem:[#allocation2 + $0x3e4] ss:$16 sps:$4 sm:$0xff]  }
  0xd3   :  { %2774 = vmatmul.mubr.bf16.vlgmr.msra.gmra.mrb[0].mxu0 %v5879_v12 }
  0xd4   :  { %2783 = vmatpush1.bf16.msra.mxu0 %v4842_v10  ;;  %2814 = vmatprep.mubr.bf16.mxu0 %v151_v38  ;;  %v4937_v10 = vld [vmem:[#allocation2 + $0x2ac] ss:$16 sps:$4 sm:$0xff]  }
  0xd5   :  { %3041 = vmatpush1.bf16.msra.mxu1 %v4845_v11  ;;  %2784 = vmatprep.subr.bf16.mxu0 %v4850_v13  ;;  %v4932_v11 = vld [vmem:[#allocation2 + $0x3e0] ss:$16 sps:$4 sm:$0xff]  }
  0xd6   :  { %3042 = vmatprep.subr.bf16.mxu1 %v4853_v14  ;;  %v136_v13 = vld [vmem:[%s5990_s0 + $0x10] sm:$0xff] }
  0xd7   :  { %v4940_v14 = vld [vmem:[#allocation2 + $0x404] ss:$16 sps:$4 sm:$0xff]  }
  0xd8   :  { %2785 = vmatpush1.bf16.msra.mxu0 %v4848_v15  ;;  %v4943_v15 = vld [vmem:[#allocation2 + $0x2cc] ss:$16 sps:$4 sm:$0xff]  }
  0xd9   :  { %3043 = vmatpush1.bf16.msra.mxu1 %v4851_v16  ;;  %2786 = vmatprep.subr.bf16.mxu0 %v4856_v17  ;;  %v5889_v16 = vpack.c.bf16 %v136_v13, %v136_v13  ;;  %v4938_v17 = vld [vmem:[#allocation2 + $0x400] ss:$16 sps:$4 sm:$0xff]  }
  0xda   :  { %3044 = vmatprep.subr.bf16.mxu1 %v4859_v18  ;;  %v4941_v18 = vld [vmem:[#allocation2 + $0x2c8] ss:$16 sps:$4 sm:$0xff]   ;;  %v5022_v13 = vld [vmem:[#allocation2 + $0x5c0] ss:$16 sps:$4 sm:$0xff]  }
  0xdc   :  { %2787 = vmatpush1.bf16.msra.mxu0 %v4854_v19  ;;  %v4946_v19 = vld [vmem:[#allocation2 + $0x424] ss:$16 sps:$4 sm:$0xff]  }
  0xdd   :  { %3045 = vmatpush1.bf16.msra.mxu1 %v4857_v20  ;;  %2788 = vmatprep.subr.bf16.mxu0 %v4862_v21  ;;  %v4949_v20 = vld [vmem:[#allocation2 + $0x2ec] ss:$16 sps:$4 sm:$0xff]  }
  0xde   :  { %3046 = vmatprep.subr.bf16.mxu1 %v4865_v22  ;;  %v139_v21 = vld [vmem:[%s5990_s0 + $0x28] sm:$0xff]  ;;  %v4944_v22 = vld [vmem:[#allocation2 + $0x420] ss:$16 sps:$4 sm:$0xff]  }
  0xe0   :  { %2789 = vmatpush1.bf16.msra.mxu0 %v4860_v23  ;;  %v5895_v23 = vpack.c.bf16 %v139_v21, %v139_v21  ;;  %v5039_v21 = vld [vmem:[#allocation2 + $0x4cc] ss:$16 sps:$4 sm:$0xff]  }
  0xe1   :  { %3047 = vmatpush1.bf16.msra.mxu1 %v4863_v24  ;;  %2790 = vmatprep.subr.bf16.mxu0 %v4868_v25  ;;  %v4947_v24 = vld [vmem:[#allocation2 + $0x2e8] ss:$16 sps:$4 sm:$0xff]   ;;  %v4952_v25 = vld [vmem:[#allocation2 + $0x444] ss:$16 sps:$4 sm:$0xff]  }
  0xe2   :  { %3048 = vmatprep.subr.bf16.mxu1 %v4871_v26  ;;  %v4955_v26 = vld [vmem:[#allocation2 + $0x30c] ss:$16 sps:$4 sm:$0xff]  }
  0xe4   :  { %2791 = vmatpush1.bf16.msra.mxu0 %v4866_v27  ;;  %v4950_v27 = vld [vmem:[#allocation2 + $0x440] ss:$16 sps:$4 sm:$0xff]  }
  0xe5   :  { %3049 = vmatpush1.bf16.msra.mxu1 %v4869_v28  ;;  %2792 = vmatprep.subr.bf16.mxu0 %v4874_v29  ;;  %v4953_v28 = vld [vmem:[#allocation2 + $0x308] ss:$16 sps:$4 sm:$0xff]   ;;  %v4958_v29 = vld [vmem:[#allocation2 + $0x464] ss:$16 sps:$4 sm:$0xff]  }
  0xe6   :  { %3050 = vmatprep.subr.bf16.mxu1 %v4877_v30  ;;  %v4961_v30 = vld [vmem:[#allocation2 + $0x32c] ss:$16 sps:$4 sm:$0xff]  }
  0xe8   :  { %2793 = vmatpush1.bf16.msra.mxu0 %v4872_v31  ;;  %v4956_v31 = vld [vmem:[#allocation2 + $0x460] ss:$16 sps:$4 sm:$0xff]  }
  0xe9   :  { %3051 = vmatpush1.bf16.msra.mxu1 %v4875_v33  ;;  %2794 = vmatprep.subr.bf16.mxu0 %v4880_v34  ;;  %v4959_v33 = vld [vmem:[#allocation2 + $0x328] ss:$16 sps:$4 sm:$0xff]   ;;  %v4964_v34 = vld [vmem:[#allocation2 + $0x484] ss:$16 sps:$4 sm:$0xff]  }
  0xea   :  { %3052 = vmatprep.subr.bf16.mxu1 %v4883_v35  ;;  %v4967_v35 = vld [vmem:[#allocation2 + $0x34c] ss:$16 sps:$4 sm:$0xff]  }
  0xec   :  { %2795 = vmatpush1.bf16.msra.mxu0 %v4878_v37  ;;  %v4965_v37 = vld [vmem:[#allocation2 + $0x348] ss:$16 sps:$4 sm:$0xff]  }
  0xed   :  { %3053 = vmatpush1.bf16.msra.mxu1 %v4881_v39  ;;  %2796 = vmatprep.subr.bf16.mxu0 %v4886_v40  ;;  %v4973_v39 = vld [vmem:[#allocation2 + $0x36c] ss:$16 sps:$4 sm:$0xff]   ;;  %v4968_v40 = vld [vmem:[#allocation2 + $0x4a0] ss:$16 sps:$4 sm:$0xff]  }
  0xee   :  { %3054 = vmatprep.subr.bf16.mxu1 %v4889_v41  ;;  %v4971_v41 = vld [vmem:[#allocation2 + $0x368] ss:$16 sps:$4 sm:$0xff]  }
  0xf0   :  { %2797 = vmatpush1.bf16.msra.mxu0 %v4884_v42  ;;  %v4976_v42 = vld [vmem:[#allocation2 + $0x4c4] ss:$16 sps:$4 sm:$0xff]  }
  0xf1   :  { %3055 = vmatpush1.bf16.msra.mxu1 %v4887_v43  ;;  %2798 = vmatprep.subr.bf16.mxu0 %v4892_v44  ;;  %v4979_v43 = vld [vmem:[#allocation2 + $0x38c] ss:$16 sps:$4 sm:$0xff]   ;;  %v4974_v44 = vld [vmem:[#allocation2 + $0x4c0] ss:$16 sps:$4 sm:$0xff]  }
  0xf2   :  { %3056 = vmatprep.subr.bf16.mxu1 %v4895_v45  ;;  %v4977_v45 = vld [vmem:[#allocation2 + $0x388] ss:$16 sps:$4 sm:$0xff]  }
  0xf4   :  { %2799 = vmatpush1.bf16.msra.mxu0 %v4890_v47  ;;  %v4982_v47 = vld [vmem:[#allocation2 + $0x4e4] ss:$16 sps:$4 sm:$0xff]  }
  0xf5   :  { %3057 = vmatpush1.bf16.msra.mxu1 %v4893_v48  ;;  %2800 = vmatprep.subr.bf16.mxu0 %v4898_v49  ;;  %v4985_v48 = vld [vmem:[#allocation2 + $0x3ac] ss:$16 sps:$4 sm:$0xff]   ;;  %v4980_v49 = vld [vmem:[#allocation2 + $0x4e0] ss:$16 sps:$4 sm:$0xff]  }
  0xf6   :  { %3058 = vmatprep.subr.bf16.mxu1 %v4901_v50  ;;  %v4983_v50 = vld [vmem:[#allocation2 + $0x3a8] ss:$16 sps:$4 sm:$0xff]  }
  0xf8   :  { %2801 = vmatpush1.bf16.msra.mxu0 %v4896_v51  ;;  %v4988_v51 = vld [vmem:[#allocation2 + $0x504] ss:$16 sps:$4 sm:$0xff]  }
  0xf9   :  { %3059 = vmatpush1.bf16.msra.mxu1 %v4899_v52  ;;  %2802 = vmatprep.subr.bf16.mxu0 %v4904_v53  ;;  %v4991_v52 = vld [vmem:[#allocation2 + $0x3cc] ss:$16 sps:$4 sm:$0xff]   ;;  %v4986_v53 = vld [vmem:[#allocation2 + $0x500] ss:$16 sps:$4 sm:$0xff]  }
  0xfa   :  { %3069 = vmatprep.subr.bf16.mxu1 %v4907_v54  ;;  %v4989_v54 = vld [vmem:[#allocation2 + $0x3c8] ss:$16 sps:$4 sm:$0xff]  }
  0xfc   :  { %3061 = vmatmul.mubr.bf16.vlgmr.msra.gmra.mrb[4].mxu1 %v5879_v12  ;;  %2803 = vmatpush1.bf16.msra.mxu0 %v4902_v55  ;;  %v4935_v12 = vld [vmem:[#allocation2 + $0x2a8] ss:$16 sps:$4 sm:$0xff]   ;;  %v4994_v55 = vld [vmem:[#allocation2 + $0x524] ss:$16 sps:$4 sm:$0xff]  }
  0xfd   :  { %3070 = vmatpush1.bf16.msra.mxu1 %v4905_v56  ;;  %2804 = vmatprep.subr.bf16.mxu0 %v4910_v57  ;;  %v4997_v56 = vld [vmem:[#allocation2 + $0x3ec] ss:$16 sps:$4 sm:$0xff]   ;;  %v4992_v57 = vld [vmem:[#allocation2 + $0x520] ss:$16 sps:$4 sm:$0xff]  }
  0xfe   :  { %3071 = vmatprep.subr.bf16.mxu1 %v4913_v58  ;;  %3101 = vmatprep.mubr.bf16.mxu1 %v151_v38  ;;  %v4970_v38 = vld [vmem:[#allocation2 + $0x4a4] ss:$16 sps:$4 sm:$0xff]   ;;  %v4995_v58 = vld [vmem:[#allocation2 + $0x3e8] ss:$16 sps:$4 sm:$0xff]  }
 0x100   :  { %2805 = vmatpush1.bf16.msra.mxu0 %v4908_v59  ;;  %v5000_v59 = vld [vmem:[#allocation2 + $0x544] ss:$16 sps:$4 sm:$0xff]  }
 0x101   :  { %3072 = vmatpush1.bf16.msra.mxu1 %v4911_v60  ;;  %2806 = vmatprep.subr.bf16.mxu0 %v4916_v61  ;;  %v5003_v60 = vld [vmem:[#allocation2 + $0x40c] ss:$16 sps:$4 sm:$0xff]   ;;  %v4998_v61 = vld [vmem:[#allocation2 + $0x540] ss:$16 sps:$4 sm:$0xff]  }
 0x102   :  { %3073 = vmatprep.subr.bf16.mxu1 %v4919_v62  ;;  %v5001_v62 = vld [vmem:[#allocation2 + $0x408] ss:$16 sps:$4 sm:$0xff]  }
 0x104   :  { %2807 = vmatpush1.bf16.msra.mxu0 %v4914_v63  ;;  %v5006_v63 = vld [vmem:[#allocation2 + $0x564] ss:$16 sps:$4 sm:$0xff]  }
 0x105   :  { %3074 = vmatpush1.bf16.msra.mxu1 %v4917_v0  ;;  %2808 = vmatprep.subr.bf16.mxu0 %v4922_v1  ;;  %v5009_v0 = vld [vmem:[#allocation2 + $0x42c] ss:$16 sps:$4 sm:$0xff]   ;;  %v5004_v1 = vld [vmem:[#allocation2 + $0x560] ss:$16 sps:$4 sm:$0xff]  }
 0x106   :  { %3075 = vmatprep.subr.bf16.mxu1 %v4925_v2  ;;  %v5007_v2 = vld [vmem:[#allocation2 + $0x428] ss:$16 sps:$4 sm:$0xff]  }
 0x108   :  { %2809 = vmatpush1.bf16.msra.mxu0 %v4920_v3  ;;  %v5012_v3 = vld [vmem:[#allocation2 + $0x584] ss:$16 sps:$4 sm:$0xff]  }
 0x109   :  { %3076 = vmatpush1.bf16.msra.mxu1 %v4923_v4  ;;  %2810 = vmatprep.subr.bf16.mxu0 %v4928_v5  ;;  %v5015_v4 = vld [vmem:[#allocation2 + $0x44c] ss:$16 sps:$4 sm:$0xff]   ;;  %v5010_v5 = vld [vmem:[#allocation2 + $0x580] ss:$16 sps:$4 sm:$0xff]  }
 0x10a   :  { %3077 = vmatprep.subr.bf16.mxu1 %v4931_v6  ;;  %v5013_v6 = vld [vmem:[#allocation2 + $0x448] ss:$16 sps:$4 sm:$0xff]  }
 0x10c   :  { %2811 = vmatpush1.bf16.msra.mxu0 %v4926_v7  ;;  %v5018_v7 = vld [vmem:[#allocation2 + $0x5a4] ss:$16 sps:$4 sm:$0xff]  }
 0x10d   :  { %3078 = vmatpush1.bf16.msra.mxu1 %v4929_v8  ;;  %2812 = vmatprep.subr.bf16.mxu0 %v4934_v9  ;;  %v5021_v8 = vld [vmem:[#allocation2 + $0x46c] ss:$16 sps:$4 sm:$0xff]   ;;  %v5016_v9 = vld [vmem:[#allocation2 + $0x5a0] ss:$16 sps:$4 sm:$0xff]  }
 0x10e   :  { %3079 = vmatprep.subr.bf16.mxu1 %v4937_v10  ;;  %v5019_v10 = vld [vmem:[#allocation2 + $0x468] ss:$16 sps:$4 sm:$0xff]  }
 0x110   :  { %2813 = vmatpush1.bf16.msra.mxu0 %v4932_v11  ;;  %v5024_v11 = vld [vmem:[#allocation2 + $0x5c4] ss:$16 sps:$4 sm:$0xff]  }
 0x111   :  { %3080 = vmatpush1.bf16.msra.mxu1 %v4935_v12  ;;  %2823 = vmatprep.subr.bf16.mxu0 %v4940_v14  ;;  %v5027_v12 = vld [vmem:[#allocation2 + $0x48c] ss:$16 sps:$4 sm:$0xff]   ;;  %v5025_v14 = vld [vmem:[#allocation2 + $0x488] ss:$16 sps:$4 sm:$0xff]  }
 0x112   :  { %3081 = vmatprep.subr.bf16.mxu1 %v4943_v15  ;;  %v5030_v15 = vld [vmem:[#allocation2 + $0x5e4] ss:$16 sps:$4 sm:$0xff]  }
 0x113   :  { %2815 = vmatmul.mubr.bf16.vlgmr.msra.gmra.mrb[0].mxu0 %v5889_v16 }
 0x114   :  { %2824 = vmatpush1.bf16.msra.mxu0 %v4938_v17  ;;  %2855 = vmatprep.mubr.bf16.mxu0 %v5895_v23  ;;  %v5028_v17 = vld [vmem:[#allocation2 + $0x5e0] ss:$16 sps:$4 sm:$0xff]  }
 0x115   :  { %3082 = vmatpush1.bf16.msra.mxu1 %v4941_v18  ;;  %2825 = vmatprep.subr.bf16.mxu0 %v4946_v19  ;;  %v5031_v18 = vld [vmem:[#allocation2 + $0x4a8] ss:$16 sps:$4 sm:$0xff]   ;;  %v138_v19 = vld [vmem:[%s5990_s0 + $0x20] sm:$0xff] }
 0x116   :  { %3083 = vmatprep.subr.bf16.mxu1 %v4949_v20  ;;  %v5036_v20 = vld [vmem:[#allocation2 + $0x604] ss:$16 sps:$4 sm:$0xff]  }
 0x118   :  { %2826 = vmatpush1.bf16.msra.mxu0 %v4944_v22  ;;  %v5903_v22 = vpack.c.bf16 %v138_v19, %v138_v19  ;;  %v5118_v19 = vld [vmem:[#allocation2 + $0x7c0] ss:$16 sps:$4 sm:$0xff]  }
 0x119   :  { %3084 = vmatpush1.bf16.msra.mxu1 %v4947_v24  ;;  %2827 = vmatprep.subr.bf16.mxu0 %v4952_v25  ;;  %v5034_v24 = vld [vmem:[#allocation2 + $0x600] ss:$16 sps:$4 sm:$0xff]   ;;  %v5037_v25 = vld [vmem:[#allocation2 + $0x4c8] ss:$16 sps:$4 sm:$0xff]  }
 0x11a   :  { %3085 = vmatprep.subr.bf16.mxu1 %v4955_v26  ;;  %v5042_v26 = vld [vmem:[#allocation2 + $0x624] ss:$16 sps:$4 sm:$0xff]  }
 0x11c   :  { %2828 = vmatpush1.bf16.msra.mxu0 %v4950_v27  ;;  %v5045_v27 = vld [vmem:[#allocation2 + $0x4ec] ss:$16 sps:$4 sm:$0xff]  }
 0x11d   :  { %3086 = vmatpush1.bf16.msra.mxu1 %v4953_v28  ;;  %2829 = vmatprep.subr.bf16.mxu0 %v4958_v29  ;;  %v5040_v29 = vld [vmem:[#allocation2 + $0x620] ss:$16 sps:$4 sm:$0xff]  }
 0x11e   :  { %3087 = vmatprep.subr.bf16.mxu1 %v4961_v30  ;;  %v5043_v30 = vld [vmem:[#allocation2 + $0x4e8] ss:$16 sps:$4 sm:$0xff]  }
 0x120   :  { %2830 = vmatpush1.bf16.msra.mxu0 %v4956_v31  ;;  %v5048_v31 = vld [vmem:[#allocation2 + $0x644] ss:$16 sps:$4 sm:$0xff]  }
 0x121   :  { %3088 = vmatpush1.bf16.msra.mxu1 %v4959_v33  ;;  %2831 = vmatprep.subr.bf16.mxu0 %v4964_v34  ;;  %v5051_v33 = vld [vmem:[#allocation2 + $0x50c] ss:$16 sps:$4 sm:$0xff]   ;;  %v5046_v34 = vld [vmem:[#allocation2 + $0x640] ss:$16 sps:$4 sm:$0xff]  }
 0x122   :  { %3089 = vmatprep.subr.bf16.mxu1 %v4967_v35  ;;  %v5049_v35 = vld [vmem:[#allocation2 + $0x508] ss:$16 sps:$4 sm:$0xff]  }
 0x124   :  { %2832 = vmatpush1.bf16.msra.mxu0 %v4962_v36  ;;  %v5054_v36 = vld [vmem:[#allocation2 + $0x664] ss:$16 sps:$4 sm:$0xff]  }
 0x125   :  { %3090 = vmatpush1.bf16.msra.mxu1 %v4965_v37  ;;  %2833 = vmatprep.subr.bf16.mxu0 %v4970_v38  ;;  %v5057_v37 = vld [vmem:[#allocation2 + $0x52c] ss:$16 sps:$4 sm:$0xff]   ;;  %v5052_v38 = vld [vmem:[#allocation2 + $0x660] ss:$16 sps:$4 sm:$0xff]  }
 0x126   :  { %3091 = vmatprep.subr.bf16.mxu1 %v4973_v39  ;;  %v5055_v39 = vld [vmem:[#allocation2 + $0x528] ss:$16 sps:$4 sm:$0xff]  }
 0x128   :  { %2834 = vmatpush1.bf16.msra.mxu0 %v4968_v40  ;;  %v5060_v40 = vld [vmem:[#allocation2 + $0x684] ss:$16 sps:$4 sm:$0xff]  }
 0x129   :  { %3092 = vmatpush1.bf16.msra.mxu1 %v4971_v41  ;;  %2835 = vmatprep.subr.bf16.mxu0 %v4976_v42  ;;  %v5063_v41 = vld [vmem:[#allocation2 + $0x54c] ss:$16 sps:$4 sm:$0xff]   ;;  %v5058_v42 = vld [vmem:[#allocation2 + $0x680] ss:$16 sps:$4 sm:$0xff]  }
 0x12a   :  { %3093 = vmatprep.subr.bf16.mxu1 %v4979_v43  ;;  %v5061_v43 = vld [vmem:[#allocation2 + $0x548] ss:$16 sps:$4 sm:$0xff]  }
 0x12c   :  { %2836 = vmatpush1.bf16.msra.mxu0 %v4974_v44  ;;  %v5066_v44 = vld [vmem:[#allocation2 + $0x6a4] ss:$16 sps:$4 sm:$0xff]  }
 0x12d   :  { %3094 = vmatpush1.bf16.msra.mxu1 %v4977_v45  ;;  %2837 = vmatprep.subr.bf16.mxu0 %v4982_v47  ;;  %v5069_v45 = vld [vmem:[#allocation2 + $0x56c] ss:$16 sps:$4 sm:$0xff]   ;;  %v5064_v47 = vld [vmem:[#allocation2 + $0x6a0] ss:$16 sps:$4 sm:$0xff]  }
 0x12e   :  { %3095 = vmatprep.subr.bf16.mxu1 %v4985_v48  ;;  %v5067_v48 = vld [vmem:[#allocation2 + $0x568] ss:$16 sps:$4 sm:$0xff]  }
 0x130   :  { %2838 = vmatpush1.bf16.msra.mxu0 %v4980_v49  ;;  %v5072_v49 = vld [vmem:[#allocation2 + $0x6c4] ss:$16 sps:$4 sm:$0xff]  }
 0x131   :  { %3096 = vmatpush1.bf16.msra.mxu1 %v4983_v50  ;;  %2839 = vmatprep.subr.bf16.mxu0 %v4988_v51  ;;  %v5075_v50 = vld [vmem:[#allocation2 + $0x58c] ss:$16 sps:$4 sm:$0xff]   ;;  %v5070_v51 = vld [vmem:[#allocation2 + $0x6c0] ss:$16 sps:$4 sm:$0xff]  }
 0x132   :  { %3097 = vmatprep.subr.bf16.mxu1 %v4991_v52  ;;  %v5073_v52 = vld [vmem:[#allocation2 + $0x588] ss:$16 sps:$4 sm:$0xff]  }
 0x134   :  { %2840 = vmatpush1.bf16.msra.mxu0 %v4986_v53  ;;  %v5078_v53 = vld [vmem:[#allocation2 + $0x6e4] ss:$16 sps:$4 sm:$0xff]  }
 0x135   :  { %3098 = vmatpush1.bf16.msra.mxu1 %v4989_v54  ;;  %2841 = vmatprep.subr.bf16.mxu0 %v4994_v55  ;;  %v5081_v54 = vld [vmem:[#allocation2 + $0x5ac] ss:$16 sps:$4 sm:$0xff]   ;;  %v5076_v55 = vld [vmem:[#allocation2 + $0x6e0] ss:$16 sps:$4 sm:$0xff]  }
 0x136   :  { %3099 = vmatprep.subr.bf16.mxu1 %v4997_v56  ;;  %v5079_v56 = vld [vmem:[#allocation2 + $0x5a8] ss:$16 sps:$4 sm:$0xff]  }
 0x138   :  { %2842 = vmatpush1.bf16.msra.mxu0 %v4992_v57  ;;  %v5084_v57 = vld [vmem:[#allocation2 + $0x704] ss:$16 sps:$4 sm:$0xff]  }
 0x139   :  { %3100 = vmatpush1.bf16.msra.mxu1 %v4995_v58  ;;  %2843 = vmatprep.subr.bf16.mxu0 %v5000_v59  ;;  %v5087_v58 = vld [vmem:[#allocation2 + $0x5cc] ss:$16 sps:$4 sm:$0xff]   ;;  %v5082_v59 = vld [vmem:[#allocation2 + $0x700] ss:$16 sps:$4 sm:$0xff]  }
 0x13a   :  { %3110 = vmatprep.subr.bf16.mxu1 %v5003_v60  ;;  %v5085_v60 = vld [vmem:[#allocation2 + $0x5c8] ss:$16 sps:$4 sm:$0xff]  }
 0x13c   :  { %3102 = vmatmul.mubr.bf16.vlgmr.msra.gmra.mrb[4].mxu1 %v5889_v16  ;;  %2844 = vmatpush1.bf16.msra.mxu0 %v4998_v61  ;;  %v5033_v16 = vld [vmem:[#allocation2 + $0x4ac] ss:$16 sps:$4 sm:$0xff]   ;;  %v5090_v61 = vld [vmem:[#allocation2 + $0x724] ss:$16 sps:$4 sm:$0xff]  }
 0x13d   :  { %3111 = vmatpush1.bf16.msra.mxu1 %v5001_v62  ;;  %2845 = vmatprep.subr.bf16.mxu0 %v5006_v63  ;;  %v5093_v62 = vld [vmem:[#allocation2 + $0x5ec] ss:$16 sps:$4 sm:$0xff]   ;;  %v5088_v63 = vld [vmem:[#allocation2 + $0x720] ss:$16 sps:$4 sm:$0xff]  }
 0x13e   :  { %3112 = vmatprep.subr.bf16.mxu1 %v5009_v0  ;;  %3142 = vmatprep.mubr.bf16.mxu1 %v5895_v23  ;;  %v141_v23 = vld [vmem:[%s5990_s0 + $0x38] sm:$0xff] }
 0x13f   :  { %v5908_v28 = vpack.c.bf16 %v141_v23, %v141_v23  ;;  %v5091_v0 = vld [vmem:[#allocation2 + $0x5e8] ss:$16 sps:$4 sm:$0xff]   ;;  %v5124_v23 = vld [vmem:[#allocation2 + $0x7e0] ss:$16 sps:$4 sm:$0xff]  }
 0x140   :  { %2846 = vmatpush1.bf16.msra.mxu0 %v5004_v1  ;;  %v5096_v1 = vld [vmem:[#allocation2 + $0x744] ss:$16 sps:$4 sm:$0xff]  }
 0x141   :  { %3113 = vmatpush1.bf16.msra.mxu1 %v5007_v2  ;;  %2847 = vmatprep.subr.bf16.mxu0 %v5012_v3  ;;  %v5099_v2 = vld [vmem:[#allocation2 + $0x60c] ss:$16 sps:$4 sm:$0xff]   ;;  %v5094_v3 = vld [vmem:[#allocation2 + $0x740] ss:$16 sps:$4 sm:$0xff]  }
 0x142   :  { %3114 = vmatprep.subr.bf16.mxu1 %v5015_v4  ;;  %v5097_v4 = vld [vmem:[#allocation2 + $0x608] ss:$16 sps:$4 sm:$0xff]  }
 0x144   :  { %2848 = vmatpush1.bf16.msra.mxu0 %v5010_v5  ;;  %v5102_v5 = vld [vmem:[#allocation2 + $0x764] ss:$16 sps:$4 sm:$0xff]  }
 0x145   :  { %3115 = vmatpush1.bf16.msra.mxu1 %v5013_v6  ;;  %2849 = vmatprep.subr.bf16.mxu0 %v5018_v7  ;;  %v5105_v6 = vld [vmem:[#allocation2 + $0x62c] ss:$16 sps:$4 sm:$0xff]   ;;  %v5100_v7 = vld [vmem:[#allocation2 + $0x760] ss:$16 sps:$4 sm:$0xff]  }
 0x146   :  { %3116 = vmatprep.subr.bf16.mxu1 %v5021_v8  ;;  %v5103_v8 = vld [vmem:[#allocation2 + $0x628] ss:$16 sps:$4 sm:$0xff]  }
 0x148   :  { %2850 = vmatpush1.bf16.msra.mxu0 %v5016_v9  ;;  %v5108_v9 = vld [vmem:[#allocation2 + $0x784] ss:$16 sps:$4 sm:$0xff]  }
 0x149   :  { %3117 = vmatpush1.bf16.msra.mxu1 %v5019_v10  ;;  %2851 = vmatprep.subr.bf16.mxu0 %v5024_v11  ;;  %v5111_v10 = vld [vmem:[#allocation2 + $0x64c] ss:$16 sps:$4 sm:$0xff]   ;;  %v5106_v11 = vld [vmem:[#allocation2 + $0x780] ss:$16 sps:$4 sm:$0xff]  }
 0x14a   :  { %3118 = vmatprep.subr.bf16.mxu1 %v5027_v12  ;;  %v5109_v12 = vld [vmem:[#allocation2 + $0x648] ss:$16 sps:$4 sm:$0xff]  }
 0x14c   :  { %2852 = vmatpush1.bf16.msra.mxu0 %v5022_v13  ;;  %v5114_v13 = vld [vmem:[#allocation2 + $0x7a4] ss:$16 sps:$4 sm:$0xff]  }
 0x14d   :  { %3119 = vmatpush1.bf16.msra.mxu1 %v5025_v14  ;;  %2853 = vmatprep.subr.bf16.mxu0 %v5030_v15  ;;  %v5117_v14 = vld [vmem:[#allocation2 + $0x66c] ss:$16 sps:$4 sm:$0xff]   ;;  %v5112_v15 = vld [vmem:[#allocation2 + $0x7a0] ss:$16 sps:$4 sm:$0xff]  }
 0x14e   :  { %3120 = vmatprep.subr.bf16.mxu1 %v5033_v16  ;;  %v5115_v16 = vld [vmem:[#allocation2 + $0x668] ss:$16 sps:$4 sm:$0xff]  }
 0x150   :  { %2854 = vmatpush1.bf16.msra.mxu0 %v5028_v17  ;;  %v5120_v17 = vld [vmem:[#allocation2 + $0x7c4] ss:$16 sps:$4 sm:$0xff]  }
 0x151   :  { %3121 = vmatpush1.bf16.msra.mxu1 %v5031_v18  ;;  %2864 = vmatprep.subr.bf16.mxu0 %v5036_v20  ;;  %v5123_v18 = vld [vmem:[#allocation2 + $0x68c] ss:$16 sps:$4 sm:$0xff]   ;;  %v5121_v20 = vld [vmem:[#allocation2 + $0x688] ss:$16 sps:$4 sm:$0xff]  }
 0x152   :  { %3122 = vmatprep.subr.bf16.mxu1 %v5039_v21  ;;  %v5126_v21 = vld [vmem:[#allocation2 + $0x7e4] ss:$16 sps:$4 sm:$0xff]  }
 0x153   :  { %2856 = vmatmul.mubr.bf16.vlgmr.msra.gmra.mrb[0].mxu0 %v5903_v22 }
 0x154   :  { %2865 = vmatpush1.bf16.msra.mxu0 %v5034_v24  ;;  %2896 = vmatprep.mubr.bf16.mxu0 %v5908_v28  ;;  %v5127_v24 = vld [vmem:[#allocation2 + $0x6a8] ss:$16 sps:$4 sm:$0xff]  }
 0x155   :  { %3123 = vmatpush1.bf16.msra.mxu1 %v5037_v25  ;;  %2866 = vmatprep.subr.bf16.mxu0 %v5042_v26  ;;  %v5132_v25 = vld [vmem:[#allocation2 + $0x804] ss:$16 sps:$4 sm:$0xff]  }
 0x156   :  { %3124 = vmatprep.subr.bf16.mxu1 %v5045_v27  ;;  %v140_v26 = vld [vmem:[%s5990_s0 + $0x30] sm:$0xff]  ;;  %v5135_v27 = vld [vmem:[#allocation2 + $0x6cc] ss:$16 sps:$4 sm:$0xff]  }
 0x158   :  { %2867 = vmatpush1.bf16.msra.mxu0 %v5040_v29  ;;  %v5130_v29 = vld [vmem:[#allocation2 + $0x800] ss:$16 sps:$4 sm:$0xff]  }
 0x159   :  { %3125 = vmatpush1.bf16.msra.mxu1 %v5043_v30  ;;  %2868 = vmatprep.subr.bf16.mxu0 %v5048_v31  ;;  %v5133_v31 = vld [vmem:[#allocation2 + $0x6c8] ss:$16 sps:$4 sm:$0xff]  }
 0x15a   :  { %3126 = vmatprep.subr.bf16.mxu1 %v5051_v33  ;;  %v5921_v33 = vpack.c.bf16 %v140_v26, %v140_v26  ;;  %v5211_v26 = vld [vmem:[#allocation2 + $0x868] ss:$16 sps:$4 sm:$0xff]  }
 0x15c   :  { %2869 = vmatpush1.bf16.msra.mxu0 %v5046_v34  ;;  %v143_v34 = vld [vmem:[%s5990_s0 + $0x48] sm:$0xff] }
 0x15d   :  { %3127 = vmatpush1.bf16.msra.mxu1 %v5049_v35  ;;  %2870 = vmatprep.subr.bf16.mxu0 %v5054_v36  ;;  %v5138_v36 = vld [vmem:[#allocation2 + $0x824] ss:$16 sps:$4 sm:$0xff]  }
 0x15e   :  { %3128 = vmatprep.subr.bf16.mxu1 %v5057_v37 }
 0x160   :  { %2871 = vmatpush1.bf16.msra.mxu0 %v5052_v38  ;;  %v5141_v38 = vld [vmem:[#allocation2 + $0x6ec] ss:$16 sps:$4 sm:$0xff]  }
 0x161   :  { %3129 = vmatpush1.bf16.msra.mxu1 %v5055_v39  ;;  %2872 = vmatprep.subr.bf16.mxu0 %v5060_v40  ;;  %v5926_v39 = vpack.c.bf16 %v143_v34, %v143_v34  ;;  %v5136_v40 = vld [vmem:[#allocation2 + $0x820] ss:$16 sps:$4 sm:$0xff]   ;;  %v5222_v34 = vld [vmem:[#allocation2 + $0x9e4] ss:$16 sps:$4 sm:$0xff]  }
 0x162   :  { %3130 = vmatprep.subr.bf16.mxu1 %v5063_v41  ;;  %v5139_v41 = vld [vmem:[#allocation2 + $0x6e8] ss:$16 sps:$4 sm:$0xff]  }
 0x164   :  { %2873 = vmatpush1.bf16.msra.mxu0 %v5058_v42  ;;  %v5144_v42 = vld [vmem:[#allocation2 + $0x844] ss:$16 sps:$4 sm:$0xff]  }
 0x165   :  { %3131 = vmatpush1.bf16.msra.mxu1 %v5061_v43  ;;  %2874 = vmatprep.subr.bf16.mxu0 %v5066_v44  ;;  %v5147_v43 = vld [vmem:[#allocation2 + $0x70c] ss:$16 sps:$4 sm:$0xff]   ;;  %v5142_v44 = vld [vmem:[#allocation2 + $0x840] ss:$16 sps:$4 sm:$0xff]  }
 0x166   :  { %3132 = vmatprep.subr.bf16.mxu1 %v5069_v45  ;;  %v5145_v45 = vld [vmem:[#allocation2 + $0x708] ss:$16 sps:$4 sm:$0xff]  }
 0x168   :  { %2875 = vmatpush1.bf16.msra.mxu0 %v5064_v47  ;;  %v5150_v47 = vld [vmem:[#allocation2 + $0x864] ss:$16 sps:$4 sm:$0xff]  }
 0x169   :  { %3133 = vmatpush1.bf16.msra.mxu1 %v5067_v48  ;;  %2876 = vmatprep.subr.bf16.mxu0 %v5072_v49  ;;  %v5153_v48 = vld [vmem:[#allocation2 + $0x72c] ss:$16 sps:$4 sm:$0xff]   ;;  %v5148_v49 = vld [vmem:[#allocation2 + $0x860] ss:$16 sps:$4 sm:$0xff]  }
 0x16a   :  { %3134 = vmatprep.subr.bf16.mxu1 %v5075_v50  ;;  %v5151_v50 = vld [vmem:[#allocation2 + $0x728] ss:$16 sps:$4 sm:$0xff]  }
 0x16c   :  { %2877 = vmatpush1.bf16.msra.mxu0 %v5070_v51  ;;  %v5156_v51 = vld [vmem:[#allocation2 + $0x884] ss:$16 sps:$4 sm:$0xff]  }
 0x16d   :  { %3135 = vmatpush1.bf16.msra.mxu1 %v5073_v52  ;;  %2878 = vmatprep.subr.bf16.mxu0 %v5078_v53  ;;  %v5159_v52 = vld [vmem:[#allocation2 + $0x74c] ss:$16 sps:$4 sm:$0xff]   ;;  %v5154_v53 = vld [vmem:[#allocation2 + $0x880] ss:$16 sps:$4 sm:$0xff]  }
 0x16e   :  { %3136 = vmatprep.subr.bf16.mxu1 %v5081_v54  ;;  %v5157_v54 = vld [vmem:[#allocation2 + $0x748] ss:$16 sps:$4 sm:$0xff]  }
 0x170   :  { %2879 = vmatpush1.bf16.msra.mxu0 %v5076_v55  ;;  %v5162_v55 = vld [vmem:[#allocation2 + $0x8a4] ss:$16 sps:$4 sm:$0xff]  }
 0x171   :  { %3137 = vmatpush1.bf16.msra.mxu1 %v5079_v56  ;;  %2880 = vmatprep.subr.bf16.mxu0 %v5084_v57  ;;  %v5165_v56 = vld [vmem:[#allocation2 + $0x76c] ss:$16 sps:$4 sm:$0xff]   ;;  %v5160_v57 = vld [vmem:[#allocation2 + $0x8a0] ss:$16 sps:$4 sm:$0xff]  }
 0x172   :  { %3138 = vmatprep.subr.bf16.mxu1 %v5087_v58  ;;  %v5163_v58 = vld [vmem:[#allocation2 + $0x768] ss:$16 sps:$4 sm:$0xff]  }
 0x174   :  { %2881 = vmatpush1.bf16.msra.mxu0 %v5082_v59  ;;  %v5168_v59 = vld [vmem:[#allocation2 + $0x8c4] ss:$16 sps:$4 sm:$0xff]  }
 0x175   :  { %3139 = vmatpush1.bf16.msra.mxu1 %v5085_v60  ;;  %2882 = vmatprep.subr.bf16.mxu0 %v5090_v61  ;;  %v5171_v60 = vld [vmem:[#allocation2 + $0x78c] ss:$16 sps:$4 sm:$0xff]   ;;  %v5166_v61 = vld [vmem:[#allocation2 + $0x8c0] ss:$16 sps:$4 sm:$0xff]  }
 0x176   :  { %3140 = vmatprep.subr.bf16.mxu1 %v5093_v62  ;;  %v5169_v62 = vld [vmem:[#allocation2 + $0x788] ss:$16 sps:$4 sm:$0xff]  }
 0x178   :  { %2883 = vmatpush1.bf16.msra.mxu0 %v5088_v63  ;;  %v5174_v63 = vld [vmem:[#allocation2 + $0x8e4] ss:$16 sps:$4 sm:$0xff]  }
 0x179   :  { %3141 = vmatpush1.bf16.msra.mxu1 %v5091_v0  ;;  %2884 = vmatprep.subr.bf16.mxu0 %v5096_v1  ;;  %v5177_v0 = vld [vmem:[#allocation2 + $0x7ac] ss:$16 sps:$4 sm:$0xff]   ;;  %v5172_v1 = vld [vmem:[#allocation2 + $0x8e0] ss:$16 sps:$4 sm:$0xff]  }
 0x17a   :  { %3151 = vmatprep.subr.bf16.mxu1 %v5099_v2  ;;  %v5175_v2 = vld [vmem:[#allocation2 + $0x7a8] ss:$16 sps:$4 sm:$0xff]  }
 0x17c   :  { %3143 = vmatmul.mubr.bf16.vlgmr.msra.gmra.mrb[4].mxu1 %v5903_v22  ;;  %2885 = vmatpush1.bf16.msra.mxu0 %v5094_v3  ;;  %v5129_v22 = vld [vmem:[#allocation2 + $0x6ac] ss:$16 sps:$4 sm:$0xff]   ;;  %v5180_v3 = vld [vmem:[#allocation2 + $0x904] ss:$16 sps:$4 sm:$0xff]  }
 0x17d   :  { %3152 = vmatpush1.bf16.msra.mxu1 %v5097_v4  ;;  %2886 = vmatprep.subr.bf16.mxu0 %v5102_v5  ;;  %v5183_v4 = vld [vmem:[#allocation2 + $0x7cc] ss:$16 sps:$4 sm:$0xff]   ;;  %v5178_v5 = vld [vmem:[#allocation2 + $0x900] ss:$16 sps:$4 sm:$0xff]  }
 0x17e   :  { %3153 = vmatprep.subr.bf16.mxu1 %v5105_v6  ;;  %3183 = vmatprep.mubr.bf16.mxu1 %v5908_v28  ;;  %v5181_v6 = vld [vmem:[#allocation2 + $0x7c8] ss:$16 sps:$4 sm:$0xff]  }
 0x180   :  { %2887 = vmatpush1.bf16.msra.mxu0 %v5100_v7  ;;  %v5186_v7 = vld [vmem:[#allocation2 + $0x924] ss:$16 sps:$4 sm:$0xff]  }
 0x181   :  { %3154 = vmatpush1.bf16.msra.mxu1 %v5103_v8  ;;  %2888 = vmatprep.subr.bf16.mxu0 %v5108_v9  ;;  %v5189_v8 = vld [vmem:[#allocation2 + $0x7ec] ss:$16 sps:$4 sm:$0xff]   ;;  %v5184_v9 = vld [vmem:[#allocation2 + $0x920] ss:$16 sps:$4 sm:$0xff]  }
 0x182   :  { %3155 = vmatprep.subr.bf16.mxu1 %v5111_v10  ;;  %v5187_v10 = vld [vmem:[#allocation2 + $0x7e8] ss:$16 sps:$4 sm:$0xff]  }
 0x184   :  { %2889 = vmatpush1.bf16.msra.mxu0 %v5106_v11  ;;  %v5192_v11 = vld [vmem:[#allocation2 + $0x944] ss:$16 sps:$4 sm:$0xff]  }
 0x185   :  { %3156 = vmatpush1.bf16.msra.mxu1 %v5109_v12  ;;  %2890 = vmatprep.subr.bf16.mxu0 %v5114_v13  ;;  %v5195_v12 = vld [vmem:[#allocation2 + $0x80c] ss:$16 sps:$4 sm:$0xff]   ;;  %v5190_v13 = vld [vmem:[#allocation2 + $0x940] ss:$16 sps:$4 sm:$0xff]  }
 0x186   :  { %3157 = vmatprep.subr.bf16.mxu1 %v5117_v14  ;;  %v5193_v14 = vld [vmem:[#allocation2 + $0x808] ss:$16 sps:$4 sm:$0xff]  }
 0x188   :  { %2891 = vmatpush1.bf16.msra.mxu0 %v5112_v15  ;;  %v5198_v15 = vld [vmem:[#allocation2 + $0x964] ss:$16 sps:$4 sm:$0xff]  }
 0x189   :  { %3158 = vmatpush1.bf16.msra.mxu1 %v5115_v16  ;;  %2892 = vmatprep.subr.bf16.mxu0 %v5120_v17  ;;  %v5201_v16 = vld [vmem:[#allocation2 + $0x82c] ss:$16 sps:$4 sm:$0xff]   ;;  %v5196_v17 = vld [vmem:[#allocation2 + $0x960] ss:$16 sps:$4 sm:$0xff]  }
 0x18a   :  { %3159 = vmatprep.subr.bf16.mxu1 %v5123_v18  ;;  %v5199_v18 = vld [vmem:[#allocation2 + $0x828] ss:$16 sps:$4 sm:$0xff]  }
 0x18c   :  { %2893 = vmatpush1.bf16.msra.mxu0 %v5118_v19  ;;  %v5204_v19 = vld [vmem:[#allocation2 + $0x984] ss:$16 sps:$4 sm:$0xff]  }
 0x18d   :  { %3160 = vmatpush1.bf16.msra.mxu1 %v5121_v20  ;;  %2894 = vmatprep.subr.bf16.mxu0 %v5126_v21  ;;  %v5207_v20 = vld [vmem:[#allocation2 + $0x84c] ss:$16 sps:$4 sm:$0xff]   ;;  %v5202_v21 = vld [vmem:[#allocation2 + $0x980] ss:$16 sps:$4 sm:$0xff]  }
 0x18e   :  { %3161 = vmatprep.subr.bf16.mxu1 %v5129_v22  ;;  %v5205_v22 = vld [vmem:[#allocation2 + $0x848] ss:$16 sps:$4 sm:$0xff]  }
 0x18f   :  { %v5917_v28 = vpop.f32.mrb[0].mxu1 }
 0x190   :  { %v5919_v30 = vpop.f32.mrb[1].mxu1  ;;  %2895 = vmatpush1.bf16.msra.mxu0 %v5124_v23  ;;  %v5210_v23 = vld [vmem:[#allocation2 + $0x9a4] ss:$16 sps:$4 sm:$0xff]  }
 0x191   :  { %v3025_v35 = vpop.f32.mrb[2].mxu1  ;;  %3162 = vmatpush1.bf16.msra.mxu1 %v5127_v24  ;;  %2905 = vmatprep.subr.bf16.mxu0 %v5132_v25  ;;  %v5213_v24 = vld [vmem:[#allocation2 + $0x86c] ss:$16 sps:$4 sm:$0xff]   ;;  %v5208_v25 = vld [vmem:[#allocation2 + $0x9a0] ss:$16 sps:$4 sm:$0xff]  }
 0x192   :  { %v3026_v37 = vpop.f32.mrb[3].mxu1  ;;  %3163 = vmatprep.subr.bf16.mxu1 %v5135_v27  ;;  %v5216_v27 = vld [vmem:[#allocation2 + $0x9c4] ss:$16 sps:$4 sm:$0xff]   ;;  %v5225_v35 = vld [vmem:[#allocation2 + $0x8ac] ss:$16 sps:$4 sm:$0xff]  }
 0x193   :  { %2897 = vmatmul.mubr.bf16.vlgmr.msra.gmra.mrb[0].mxu0 %v5921_v33  ;;  %v5223_v37 = vld [vmem:[#allocation2 + $0x8a8] ss:$16 sps:$4 sm:$0xff]  }
 0x194   :  { %2906 = vmatpush1.bf16.msra.mxu0 %v5130_v29  ;;  %2937 = vmatprep.mubr.bf16.mxu0 %v5926_v39  ;;  %v5219_v29 = vld [vmem:[#allocation2 + $0x88c] ss:$16 sps:$4 sm:$0xff]  }
 0x195   :  { %3164 = vmatpush1.bf16.msra.mxu1 %v5133_v31  ;;  %2907 = vmatprep.subr.bf16.mxu0 %v5138_v36  ;;  %v5214_v31 = vld [vmem:[#allocation2 + $0x9c0] ss:$16 sps:$4 sm:$0xff]  }
 0x196   :  { %3165 = vmatprep.subr.bf16.mxu1 %v5141_v38  ;;  %v5220_v36 = vld [vmem:[#allocation2 + $0x9e0] ss:$16 sps:$4 sm:$0xff]   ;;  %v5228_v38 = vld [vmem:[#allocation2 + $0xa04] ss:$16 sps:$4 sm:$0xff]  }
 0x198   :  { %2908 = vmatpush1.bf16.msra.mxu0 %v5136_v40  ;;  %v142_v40 = vld [vmem:[%s5990_s0 + $0x40] sm:$0xff] }
 0x199   :  { %3166 = vmatpush1.bf16.msra.mxu1 %v5139_v41  ;;  %2909 = vmatprep.subr.bf16.mxu0 %v5144_v42  ;;  %v145_v41 = vld [vmem:[%s5990_s0 + $0x58] sm:$0xff]  ;;  %v5226_v42 = vld [vmem:[#allocation2 + $0xa00] ss:$16 sps:$4 sm:$0xff]  }
 0x19a   :  { %3167 = vmatprep.subr.bf16.mxu1 %v5147_v43  ;;  %v5229_v43 = vld [vmem:[#allocation2 + $0x8c8] ss:$16 sps:$4 sm:$0xff]  }
 0x19c   :  { %2910 = vmatpush1.bf16.msra.mxu0 %v5142_v44  ;;  %v5938_v44 = vpack.c.bf16 %v142_v40, %v142_v40  ;;  %v5310_v40 = vld [vmem:[#allocation2 + $0xbc0] ss:$16 sps:$4 sm:$0xff]  }
 0x19d   :  { %3168 = vmatpush1.bf16.msra.mxu1 %v5145_v45  ;;  %2911 = vmatprep.subr.bf16.mxu0 %v5150_v47  ;;  %v5234_v45 = vld [vmem:[#allocation2 + $0xa24] ss:$16 sps:$4 sm:$0xff]   ;;  %v5237_v47 = vld [vmem:[#allocation2 + $0x8ec] ss:$16 sps:$4 sm:$0xff]  }
 0x19e   :  { %3169 = vmatprep.subr.bf16.mxu1 %v5153_v48  ;;  %v5940_v48 = vpack.c.bf16 %v145_v41, %v145_v41  ;;  %v5313_v41 = vld [vmem:[#allocation2 + $0xa88] ss:$16 sps:$4 sm:$0xff]  }
 0x1a0   :  { %2912 = vmatpush1.bf16.msra.mxu0 %v5148_v49  ;;  %v5232_v49 = vld [vmem:[#allocation2 + $0xa20] ss:$16 sps:$4 sm:$0xff]  }
 0x1a1   :  { %3170 = vmatpush1.bf16.msra.mxu1 %v5151_v50  ;;  %2913 = vmatprep.subr.bf16.mxu0 %v5156_v51  ;;  %v5235_v50 = vld [vmem:[#allocation2 + $0x8e8] ss:$16 sps:$4 sm:$0xff]   ;;  %v5240_v51 = vld [vmem:[#allocation2 + $0xa44] ss:$16 sps:$4 sm:$0xff]  }
 0x1a2   :  { %3171 = vmatprep.subr.bf16.mxu1 %v5159_v52  ;;  %v5243_v52 = vld [vmem:[#allocation2 + $0x90c] ss:$16 sps:$4 sm:$0xff]  }
 0x1a4   :  { %2914 = vmatpush1.bf16.msra.mxu0 %v5154_v53  ;;  %v5238_v53 = vld [vmem:[#allocation2 + $0xa40] ss:$16 sps:$4 sm:$0xff]  }
 0x1a5   :  { %3172 = vmatpush1.bf16.msra.mxu1 %v5157_v54  ;;  %2915 = vmatprep.subr.bf16.mxu0 %v5162_v55  ;;  %v5241_v54 = vld [vmem:[#allocation2 + $0x908] ss:$16 sps:$4 sm:$0xff]   ;;  %v5246_v55 = vld [vmem:[#allocation2 + $0xa64] ss:$16 sps:$4 sm:$0xff]  }
 0x1a6   :  { %3173 = vmatprep.subr.bf16.mxu1 %v5165_v56  ;;  %v5249_v56 = vld [vmem:[#allocation2 + $0x92c] ss:$16 sps:$4 sm:$0xff]  }
 0x1a8   :  { %2916 = vmatpush1.bf16.msra.mxu0 %v5160_v57  ;;  %v5244_v57 = vld [vmem:[#allocation2 + $0xa60] ss:$16 sps:$4 sm:$0xff]  }
 0x1a9   :  { %3174 = vmatpush1.bf16.msra.mxu1 %v5163_v58  ;;  %2917 = vmatprep.subr.bf16.mxu0 %v5168_v59  ;;  %v5247_v58 = vld [vmem:[#allocation2 + $0x928] ss:$16 sps:$4 sm:$0xff]   ;;  %v5252_v59 = vld [vmem:[#allocation2 + $0xa84] ss:$16 sps:$4 sm:$0xff]  }
 0x1aa   :  { %3175 = vmatprep.subr.bf16.mxu1 %v5171_v60  ;;  %v5255_v60 = vld [vmem:[#allocation2 + $0x94c] ss:$16 sps:$4 sm:$0xff]  }
 0x1ac   :  { %2918 = vmatpush1.bf16.msra.mxu0 %v5166_v61  ;;  %v5250_v61 = vld [vmem:[#allocation2 + $0xa80] ss:$16 sps:$4 sm:$0xff]  }
 0x1ad   :  { %3176 = vmatpush1.bf16.msra.mxu1 %v5169_v62  ;;  %2919 = vmatprep.subr.bf16.mxu0 %v5174_v63  ;;  %v5253_v62 = vld [vmem:[#allocation2 + $0x948] ss:$16 sps:$4 sm:$0xff]   ;;  %v5258_v63 = vld [vmem:[#allocation2 + $0xaa4] ss:$16 sps:$4 sm:$0xff]  }
 0x1ae   :  { %3177 = vmatprep.subr.bf16.mxu1 %v5177_v0  ;;  %v5261_v0 = vld [vmem:[#allocation2 + $0x96c] ss:$16 sps:$4 sm:$0xff]  }
 0x1b0   :  { %2920 = vmatpush1.bf16.msra.mxu0 %v5172_v1  ;;  %v5256_v1 = vld [vmem:[#allocation2 + $0xaa0] ss:$16 sps:$4 sm:$0xff]  }
 0x1b1   :  { %3178 = vmatpush1.bf16.msra.mxu1 %v5175_v2  ;;  %2921 = vmatprep.subr.bf16.mxu0 %v5180_v3  ;;  %v5259_v2 = vld [vmem:[#allocation2 + $0x968] ss:$16 sps:$4 sm:$0xff]   ;;  %v5264_v3 = vld [vmem:[#allocation2 + $0xac4] ss:$16 sps:$4 sm:$0xff]  }
 0x1b2   :  { %3179 = vmatprep.subr.bf16.mxu1 %v5183_v4  ;;  %v5267_v4 = vld [vmem:[#allocation2 + $0x98c] ss:$16 sps:$4 sm:$0xff]  }
 0x1b4   :  { %2922 = vmatpush1.bf16.msra.mxu0 %v5178_v5  ;;  %v5262_v5 = vld [vmem:[#allocation2 + $0xac0] ss:$16 sps:$4 sm:$0xff]  }
 0x1b5   :  { %3180 = vmatpush1.bf16.msra.mxu1 %v5181_v6  ;;  %2923 = vmatprep.subr.bf16.mxu0 %v5186_v7  ;;  %v5265_v6 = vld [vmem:[#allocation2 + $0x988] ss:$16 sps:$4 sm:$0xff]   ;;  %v5270_v7 = vld [vmem:[#allocation2 + $0xae4] ss:$16 sps:$4 sm:$0xff]  }
 0x1b6   :  { %3181 = vmatprep.subr.bf16.mxu1 %v5189_v8  ;;  %v5273_v8 = vld [vmem:[#allocation2 + $0x9ac] ss:$16 sps:$4 sm:$0xff]  }
 0x1b8   :  { %2924 = vmatpush1.bf16.msra.mxu0 %v5184_v9  ;;  %v5268_v9 = vld [vmem:[#allocation2 + $0xae0] ss:$16 sps:$4 sm:$0xff]  }
 0x1b9   :  { %3182 = vmatpush1.bf16.msra.mxu1 %v5187_v10  ;;  %2925 = vmatprep.subr.bf16.mxu0 %v5192_v11  ;;  %v5271_v10 = vld [vmem:[#allocation2 + $0x9a8] ss:$16 sps:$4 sm:$0xff]   ;;  %v5276_v11 = vld [vmem:[#allocation2 + $0xb04] ss:$16 sps:$4 sm:$0xff]  }
 0x1ba   :  { %3192 = vmatprep.subr.bf16.mxu1 %v5195_v12  ;;  %v5279_v12 = vld [vmem:[#allocation2 + $0x9cc] ss:$16 sps:$4 sm:$0xff]  }
 0x1bc   :  { %3184 = vmatmul.mubr.bf16.vlgmr.msra.gmra.mrb[4].mxu1 %v5921_v33  ;;  %2926 = vmatpush1.bf16.msra.mxu0 %v5190_v13  ;;  %v5217_v33 = vld [vmem:[#allocation2 + $0x888] ss:$16 sps:$4 sm:$0xff]   ;;  %v5274_v13 = vld [vmem:[#allocation2 + $0xb00] ss:$16 sps:$4 sm:$0xff]  }
 0x1bd   :  { %3193 = vmatpush1.bf16.msra.mxu1 %v5193_v14  ;;  %2927 = vmatprep.subr.bf16.mxu0 %v5198_v15  ;;  %v5277_v14 = vld [vmem:[#allocation2 + $0x9c8] ss:$16 sps:$4 sm:$0xff]   ;;  %v5282_v15 = vld [vmem:[#allocation2 + $0xb24] ss:$16 sps:$4 sm:$0xff]  }
 0x1be   :  { %3194 = vmatprep.subr.bf16.mxu1 %v5201_v16  ;;  %3224 = vmatprep.mubr.bf16.mxu1 %v5926_v39  ;;  %v5231_v39 = vld [vmem:[#allocation2 + $0x8cc] ss:$16 sps:$4 sm:$0xff]  }
 0x1bf   :  { %v5285_v16 = vld [vmem:[#allocation2 + $0x9ec] ss:$16 sps:$4 sm:$0xff]  }
 0x1c0   :  { %2928 = vmatpush1.bf16.msra.mxu0 %v5196_v17  ;;  %v5280_v17 = vld [vmem:[#allocation2 + $0xb20] ss:$16 sps:$4 sm:$0xff]  }
 0x1c1   :  { %3195 = vmatpush1.bf16.msra.mxu1 %v5199_v18  ;;  %2929 = vmatprep.subr.bf16.mxu0 %v5204_v19  ;;  %v5283_v18 = vld [vmem:[#allocation2 + $0x9e8] ss:$16 sps:$4 sm:$0xff]   ;;  %v5288_v19 = vld [vmem:[#allocation2 + $0xb44] ss:$16 sps:$4 sm:$0xff]  }
 0x1c2   :  { %3196 = vmatprep.subr.bf16.mxu1 %v5207_v20  ;;  %v5291_v20 = vld [vmem:[#allocation2 + $0xa0c] ss:$16 sps:$4 sm:$0xff]  }
 0x1c4   :  { %2930 = vmatpush1.bf16.msra.mxu0 %v5202_v21  ;;  %v5286_v21 = vld [vmem:[#allocation2 + $0xb40] ss:$16 sps:$4 sm:$0xff]  }
 0x1c5   :  { %3197 = vmatpush1.bf16.msra.mxu1 %v5205_v22  ;;  %2931 = vmatprep.subr.bf16.mxu0 %v5210_v23  ;;  %v5289_v22 = vld [vmem:[#allocation2 + $0xa08] ss:$16 sps:$4 sm:$0xff]   ;;  %v5294_v23 = vld [vmem:[#allocation2 + $0xb64] ss:$16 sps:$4 sm:$0xff]  }
 0x1c6   :  { %3198 = vmatprep.subr.bf16.mxu1 %v5213_v24  ;;  %v5297_v24 = vld [vmem:[#allocation2 + $0xa2c] ss:$16 sps:$4 sm:$0xff]  }
 0x1c8   :  { %2932 = vmatpush1.bf16.msra.mxu0 %v5208_v25  ;;  %v5292_v25 = vld [vmem:[#allocation2 + $0xb60] ss:$16 sps:$4 sm:$0xff]  }
 0x1c9   :  { %3199 = vmatpush1.bf16.msra.mxu1 %v5211_v26  ;;  %2933 = vmatprep.subr.bf16.mxu0 %v5216_v27  ;;  %v5295_v26 = vld [vmem:[#allocation2 + $0xa28] ss:$16 sps:$4 sm:$0xff]   ;;  %v5300_v27 = vld [vmem:[#allocation2 + $0xb84] ss:$16 sps:$4 sm:$0xff]  }
 0x1ca   :  { %3200 = vmatprep.subr.bf16.mxu1 %v5219_v29  ;;  %v5303_v29 = vld [vmem:[#allocation2 + $0xa4c] ss:$16 sps:$4 sm:$0xff]  }
 0x1cc   :  { %2934 = vmatpush1.bf16.msra.mxu0 %v5214_v31  ;;  %v5298_v31 = vld [vmem:[#allocation2 + $0xb80] ss:$16 sps:$4 sm:$0xff]  }
 0x1cd   :  { %3201 = vmatpush1.bf16.msra.mxu1 %v5217_v33  ;;  %2935 = vmatprep.subr.bf16.mxu0 %v5222_v34  ;;  %v5301_v33 = vld [vmem:[#allocation2 + $0xa48] ss:$16 sps:$4 sm:$0xff]   ;;  %v5306_v34 = vld [vmem:[#allocation2 + $0xba4] ss:$16 sps:$4 sm:$0xff]  }
 0x1ce   :  { %3202 = vmatprep.subr.bf16.mxu1 %v5225_v35  ;;  %v5309_v35 = vld [vmem:[#allocation2 + $0xa6c] ss:$16 sps:$4 sm:$0xff]  }
 0x1d0   :  { %2936 = vmatpush1.bf16.msra.mxu0 %v5220_v36  ;;  %v5304_v36 = vld [vmem:[#allocation2 + $0xba0] ss:$16 sps:$4 sm:$0xff]  }
 0x1d1   :  { %3203 = vmatpush1.bf16.msra.mxu1 %v5223_v37  ;;  %2946 = vmatprep.subr.bf16.mxu0 %v5228_v38  ;;  %v5307_v37 = vld [vmem:[#allocation2 + $0xa68] ss:$16 sps:$4 sm:$0xff]   ;;  %v5312_v38 = vld [vmem:[#allocation2 + $0xbc4] ss:$16 sps:$4 sm:$0xff]  }
 0x1d2   :  { %3204 = vmatprep.subr.bf16.mxu1 %v5231_v39  ;;  %v5315_v39 = vld [vmem:[#allocation2 + $0xa8c] ss:$16 sps:$4 sm:$0xff]  }
 0x1d3   :  { %2938 = vmatmul.mubr.bf16.vlgmr.msra.gmra.mrb[0].mxu0 %v5938_v44 }
 0x1d4   :  { %2947 = vmatpush1.bf16.msra.mxu0 %v5226_v42  ;;  %2978 = vmatprep.mubr.bf16.mxu0 %v5940_v48  ;;  %v5318_v42 = vld [vmem:[#allocation2 + $0xbe4] ss:$16 sps:$4 sm:$0xff]  }
 0x1d5   :  { %3205 = vmatpush1.bf16.msra.mxu1 %v5229_v43  ;;  %2948 = vmatprep.subr.bf16.mxu0 %v5234_v45  ;;  %v5321_v43 = vld [vmem:[#allocation2 + $0xaac] ss:$16 sps:$4 sm:$0xff]   ;;  %v5319_v45 = vld [vmem:[#allocation2 + $0xaa8] ss:$16 sps:$4 sm:$0xff]  }
 0x1d6   :  { %3206 = vmatprep.subr.bf16.mxu1 %v5237_v47  ;;  %v144_v47 = vld [vmem:[%s5990_s0 + $0x50] sm:$0xff] }
 0x1d8   :  { %2949 = vmatpush1.bf16.msra.mxu0 %v5232_v49  ;;  %v5384_v49 = vld [vmem:[#allocation6 + $0x4] ss:$8 sps:$4 sm:$0xff]  }
 0x1d9   :  { %3207 = vmatpush1.bf16.msra.mxu1 %v5235_v50  ;;  %2950 = vmatprep.subr.bf16.mxu0 %v5240_v51  ;;  %v5949_v50 = vpack.c.bf16 %v144_v47, %v144_v47  ;;  %v5322_v51 = vld [vmem:[#allocation2 + $0xac8] ss:$16 sps:$4 sm:$0xff]  }
 0x1da   :  { %3208 = vmatprep.subr.bf16.mxu1 %v5243_v52  ;;  %v5382_v52 = vld [vmem:[#allocation6] ss:$8 sps:$4 sm:$0xff]   ;;  %v5367_v47 = vld [vmem:[#allocation2 + $0xca8] ss:$16 sps:$4 sm:$0xff]  }
 0x1dc   :  { %2951 = vmatpush1.bf16.msra.mxu0 %v5238_v53  ;;  %v5327_v53 = vld [vmem:[#allocation2 + $0xaec] ss:$16 sps:$4 sm:$0xff]  }
 0x1dd   :  { %3209 = vmatpush1.bf16.msra.mxu1 %v5241_v54  ;;  %2952 = vmatprep.subr.bf16.mxu0 %v5246_v55  ;;  %v5387_v54 = vld [vmem:[#allocation6 + $0x14] ss:$8 sps:$4 sm:$0xff]  }
 0x1de   :  { %3210 = vmatprep.subr.bf16.mxu1 %v5249_v56  ;;  %v5325_v55 = vld [vmem:[#allocation2 + $0xae8] ss:$16 sps:$4 sm:$0xff]   ;;  %v5385_v56 = vld [vmem:[#allocation6 + $0x10] ss:$8 sps:$4 sm:$0xff]  }
 0x1e0   :  { %2953 = vmatpush1.bf16.msra.mxu0 %v5244_v57  ;;  %v5330_v57 = vld [vmem:[#allocation2 + $0xb0c] ss:$16 sps:$4 sm:$0xff]  }
 0x1e1   :  { %3211 = vmatpush1.bf16.msra.mxu1 %v5247_v58  ;;  %2954 = vmatprep.subr.bf16.mxu0 %v5252_v59  ;;  %v5390_v58 = vld [vmem:[#allocation6 + $0x24] ss:$8 sps:$4 sm:$0xff]  }
 0x1e2   :  { %3212 = vmatprep.subr.bf16.mxu1 %v5255_v60  ;;  %v5328_v59 = vld [vmem:[#allocation2 + $0xb08] ss:$16 sps:$4 sm:$0xff]   ;;  %v5388_v60 = vld [vmem:[#allocation6 + $0x20] ss:$8 sps:$4 sm:$0xff]  }
 0x1e4   :  { %2955 = vmatpush1.bf16.msra.mxu0 %v5250_v61  ;;  %v5333_v61 = vld [vmem:[#allocation2 + $0xb2c] ss:$16 sps:$4 sm:$0xff]  }
 0x1e5   :  { %3213 = vmatpush1.bf16.msra.mxu1 %v5253_v62  ;;  %2956 = vmatprep.subr.bf16.mxu0 %v5258_v63  ;;  %v5393_v62 = vld [vmem:[#allocation6 + $0x34] ss:$8 sps:$4 sm:$0xff]  }
 0x1e6   :  { %3214 = vmatprep.subr.bf16.mxu1 %v5261_v0  ;;  %v5331_v63 = vld [vmem:[#allocation2 + $0xb28] ss:$16 sps:$4 sm:$0xff]   ;;  %v5391_v0 = vld [vmem:[#allocation6 + $0x30] ss:$8 sps:$4 sm:$0xff]  }
 0x1e8   :  { %2957 = vmatpush1.bf16.msra.mxu0 %v5256_v1  ;;  %v5336_v1 = vld [vmem:[#allocation2 + $0xb4c] ss:$16 sps:$4 sm:$0xff]  }
 0x1e9   :  { %3215 = vmatpush1.bf16.msra.mxu1 %v5259_v2  ;;  %2958 = vmatprep.subr.bf16.mxu0 %v5264_v3  ;;  %v5396_v2 = vld [vmem:[#allocation6 + $0x44] ss:$8 sps:$4 sm:$0xff]  }
 0x1ea   :  { %3216 = vmatprep.subr.bf16.mxu1 %v5267_v4  ;;  %v5334_v3 = vld [vmem:[#allocation2 + $0xb48] ss:$16 sps:$4 sm:$0xff]   ;;  %v5394_v4 = vld [vmem:[#allocation6 + $0x40] ss:$8 sps:$4 sm:$0xff]  }
 0x1ec   :  { %2959 = vmatpush1.bf16.msra.mxu0 %v5262_v5  ;;  %v5339_v5 = vld [vmem:[#allocation2 + $0xb6c] ss:$16 sps:$4 sm:$0xff]  }
 0x1ed   :  { %3217 = vmatpush1.bf16.msra.mxu1 %v5265_v6  ;;  %2960 = vmatprep.subr.bf16.mxu0 %v5270_v7  ;;  %v5399_v6 = vld [vmem:[#allocation6 + $0x54] ss:$8 sps:$4 sm:$0xff]  }
 0x1ee   :  { %3218 = vmatprep.subr.bf16.mxu1 %v5273_v8  ;;  %v5337_v7 = vld [vmem:[#allocation2 + $0xb68] ss:$16 sps:$4 sm:$0xff]   ;;  %v5397_v8 = vld [vmem:[#allocation6 + $0x50] ss:$8 sps:$4 sm:$0xff]  }
 0x1f0   :  { %2961 = vmatpush1.bf16.msra.mxu0 %v5268_v9  ;;  %v5342_v9 = vld [vmem:[#allocation2 + $0xb8c] ss:$16 sps:$4 sm:$0xff]  }
 0x1f1   :  { %3219 = vmatpush1.bf16.msra.mxu1 %v5271_v10  ;;  %2962 = vmatprep.subr.bf16.mxu0 %v5276_v11  ;;  %v5402_v10 = vld [vmem:[#allocation6 + $0x64] ss:$8 sps:$4 sm:$0xff]  }
 0x1f2   :  { %3220 = vmatprep.subr.bf16.mxu1 %v5279_v12  ;;  %v5340_v11 = vld [vmem:[#allocation2 + $0xb88] ss:$16 sps:$4 sm:$0xff]   ;;  %v5400_v12 = vld [vmem:[#allocation6 + $0x60] ss:$8 sps:$4 sm:$0xff]  }
 0x1f4   :  { %2963 = vmatpush1.bf16.msra.mxu0 %v5274_v13  ;;  %v5345_v13 = vld [vmem:[#allocation2 + $0xbac] ss:$16 sps:$4 sm:$0xff]  }
 0x1f5   :  { %3221 = vmatpush1.bf16.msra.mxu1 %v5277_v14  ;;  %2964 = vmatprep.subr.bf16.mxu0 %v5282_v15  ;;  %v5405_v14 = vld [vmem:[#allocation6 + $0x74] ss:$8 sps:$4 sm:$0xff]  }
 0x1f6   :  { %3222 = vmatprep.subr.bf16.mxu1 %v5285_v16  ;;  %v5343_v15 = vld [vmem:[#allocation2 + $0xba8] ss:$16 sps:$4 sm:$0xff]   ;;  %v5403_v16 = vld [vmem:[#allocation6 + $0x70] ss:$8 sps:$4 sm:$0xff]  }
 0x1f8   :  { %2965 = vmatpush1.bf16.msra.mxu0 %v5280_v17  ;;  %v5348_v17 = vld [vmem:[#allocation2 + $0xbcc] ss:$16 sps:$4 sm:$0xff]  }
 0x1f9   :  { %3223 = vmatpush1.bf16.msra.mxu1 %v5283_v18  ;;  %2966 = vmatprep.subr.bf16.mxu0 %v5288_v19  ;;  %v5408_v18 = vld [vmem:[#allocation6 + $0x84] ss:$8 sps:$4 sm:$0xff]  }
 0x1fa   :  { %3233 = vmatprep.subr.bf16.mxu1 %v5291_v20  ;;  %v5346_v19 = vld [vmem:[#allocation2 + $0xbc8] ss:$16 sps:$4 sm:$0xff]   ;;  %v5406_v20 = vld [vmem:[#allocation6 + $0x80] ss:$8 sps:$4 sm:$0xff]  }
 0x1fc   :  { %3225 = vmatmul.mubr.bf16.vlgmr.msra.gmra.mrb[4].mxu1 %v5938_v44  ;;  %2967 = vmatpush1.bf16.msra.mxu0 %v5286_v21  ;;  %v5316_v44 = vld [vmem:[#allocation2 + $0xbe0] ss:$16 sps:$4 sm:$0xff]   ;;  %v5351_v21 = vld [vmem:[#allocation2 + $0xbec] ss:$16 sps:$4 sm:$0xff]  }
 0x1fd   :  { %3234 = vmatpush1.bf16.msra.mxu1 %v5289_v22  ;;  %2968 = vmatprep.subr.bf16.mxu0 %v5294_v23  ;;  %v5411_v22 = vld [vmem:[#allocation6 + $0x94] ss:$8 sps:$4 sm:$0xff]  }
 0x1fe   :  { %3235 = vmatprep.subr.bf16.mxu1 %v5297_v24  ;;  %3265 = vmatprep.mubr.bf16.mxu1 %v5940_v48  ;;  %v5324_v48 = vld [vmem:[#allocation2 + $0xacc] ss:$16 sps:$4 sm:$0xff]   ;;  %v5349_v23 = vld [vmem:[#allocation2 + $0xbe8] ss:$16 sps:$4 sm:$0xff]  }
 0x1ff   :  { %v5409_v24 = vld [vmem:[#allocation6 + $0x90] ss:$8 sps:$4 sm:$0xff]  }
 0x200   :  { %2969 = vmatpush1.bf16.msra.mxu0 %v5292_v25  ;;  %v5354_v25 = vld [vmem:[#allocation2 + $0xc0c] ss:$16 sps:$4 sm:$0xff]  }
 0x201   :  { %3236 = vmatpush1.bf16.msra.mxu1 %v5295_v26  ;;  %2970 = vmatprep.subr.bf16.mxu0 %v5300_v27  ;;  %v5414_v26 = vld [vmem:[#allocation6 + $0xa4] ss:$8 sps:$4 sm:$0xff]  }
 0x202   :  { %3237 = vmatprep.subr.bf16.mxu1 %v5303_v29  ;;  %v5352_v27 = vld [vmem:[#allocation2 + $0xc08] ss:$16 sps:$4 sm:$0xff]   ;;  %v5357_v29 = vld [vmem:[#allocation2 + $0xc2c] ss:$16 sps:$4 sm:$0xff]  }
 0x204   :  { %2971 = vmatpush1.bf16.msra.mxu0 %v5298_v31  ;;  %v5412_v31 = vld [vmem:[#allocation6 + $0xa0] ss:$8 sps:$4 sm:$0xff]  }
 0x205   :  { %3238 = vmatpush1.bf16.msra.mxu1 %v5301_v33  ;;  %2972 = vmatprep.subr.bf16.mxu0 %v5306_v34  ;;  %v5417_v33 = vld [vmem:[#allocation6 + $0xb4] ss:$8 sps:$4 sm:$0xff]  }
 0x206   :  { %3239 = vmatprep.subr.bf16.mxu1 %v5309_v35  ;;  %v5355_v34 = vld [vmem:[#allocation2 + $0xc28] ss:$16 sps:$4 sm:$0xff]   ;;  %v5360_v35 = vld [vmem:[#allocation2 + $0xc4c] ss:$16 sps:$4 sm:$0xff]  }
 0x208   :  { %2973 = vmatpush1.bf16.msra.mxu0 %v5304_v36  ;;  %v5415_v36 = vld [vmem:[#allocation6 + $0xb0] ss:$8 sps:$4 sm:$0xff]  }
 0x209   :  { %3240 = vmatpush1.bf16.msra.mxu1 %v5307_v37  ;;  %2974 = vmatprep.subr.bf16.mxu0 %v5312_v38  ;;  %v5420_v37 = vld [vmem:[#allocation6 + $0xc4] ss:$8 sps:$4 sm:$0xff]  }
 0x20a   :  { %3241 = vmatprep.subr.bf16.mxu1 %v5315_v39  ;;  %v5358_v38 = vld [vmem:[#allocation2 + $0xc48] ss:$16 sps:$4 sm:$0xff]   ;;  %v5363_v39 = vld [vmem:[#allocation2 + $0xc6c] ss:$16 sps:$4 sm:$0xff]  }
 0x20c   :  { %2975 = vmatpush1.bf16.msra.mxu0 %v5310_v40  ;;  %v5418_v40 = vld [vmem:[#allocation6 + $0xc0] ss:$8 sps:$4 sm:$0xff]  }
 0x20d   :  { %3242 = vmatpush1.bf16.msra.mxu1 %v5313_v41  ;;  %2976 = vmatprep.subr.bf16.mxu0 %v5318_v42  ;;  %v5423_v41 = vld [vmem:[#allocation6 + $0xd4] ss:$8 sps:$4 sm:$0xff]  }
 0x20e   :  { %3243 = vmatprep.subr.bf16.mxu1 %v5321_v43  ;;  %v5361_v42 = vld [vmem:[#allocation2 + $0xc68] ss:$16 sps:$4 sm:$0xff]   ;;  %v5366_v43 = vld [vmem:[#allocation2 + $0xc8c] ss:$16 sps:$4 sm:$0xff]  }
 0x210   :  { %2977 = vmatpush1.bf16.msra.mxu0 %v5316_v44  ;;  %v5364_v44 = vld [vmem:[#allocation2 + $0xc88] ss:$16 sps:$4 sm:$0xff]  }
 0x211   :  { %3244 = vmatpush1.bf16.msra.mxu1 %v5319_v45  ;;  %3719 = vmatprep.subr.bf16.mxu0 %v5384_v49  ;;  %v5369_v45 = vld [vmem:[#allocation2 + $0xcac] ss:$16 sps:$4 sm:$0xff]   ;;  %v5370_v49 = vld [vmem:[#allocation2 + $0xcc8] ss:$16 sps:$4 sm:$0xff]  }
 0x212   :  { %3245 = vmatprep.subr.bf16.mxu1 %v5324_v48  ;;  %v5372_v48 = vld [vmem:[#allocation2 + $0xccc] ss:$16 sps:$4 sm:$0xff]  }
 0x213   :  { %2979 = vmatmul.mubr.bf16.vlgmr.msra.gmra.mrb[0].mxu0 %v5949_v50 }
 0x214   :  { %3720 = vmatpush1.bf16.msra.mxu0 %v5382_v52  ;;  %v5378_v52 = vld [vmem:[#allocation2 + $0xd0c] ss:$16 sps:$4 sm:$0xff]  }
 0x215   :  { %3246 = vmatpush1.bf16.msra.mxu1 %v5322_v51  ;;  %3721 = vmatprep.subr.bf16.mxu0 %v5387_v54  ;;  %v5373_v51 = vld [vmem:[#allocation2 + $0xce8] ss:$16 sps:$4 sm:$0xff]   ;;  %v5379_v54 = vld [vmem:[#allocation2 + $0xd2c] ss:$16 sps:$4 sm:$0x1f]  }
 0x216   :  { %3247 = vmatprep.subr.bf16.mxu1 %v5327_v53  ;;  %v5376_v53 = vld [vmem:[#allocation2 + $0xd08] ss:$16 sps:$4 sm:$0xff]  }
 0x218   :  { %3722 = vmatpush1.bf16.msra.mxu0 %v5385_v56 }
 0x219   :  { %3248 = vmatpush1.bf16.msra.mxu1 %v5325_v55  ;;  %3723 = vmatprep.subr.bf16.mxu0 %v5390_v58  ;;  %v5381_v55 = vld [vmem:[#allocation2 + $0xd28] ss:$16 sps:$4 sm:$0x1f]   ;;  %v5424_v58 = vld [vmem:[#allocation6 + $0xe0] ss:$8 sps:$4 sm:$0xff]  }
 0x21a   :  { %3249 = vmatprep.subr.bf16.mxu1 %v5330_v57  ;;  %v2736_v56 = vsel %vm2728_vm1, %v5381_v55, 0  ;;  %v5426_v57 = vld [vmem:[#allocation6 + $0xe4] ss:$8 sps:$4 sm:$0xff]   ;;  %v5471_v55 = vld [vmem:[#allocation6 + $0x1d4] ss:$8 sps:$4 sm:$0xff]  }
 0x21c   :  { %3724 = vmatpush1.bf16.msra.mxu0 %v5388_v60  ;;  %v5427_v60 = vld [vmem:[#allocation6 + $0xf0] ss:$8 sps:$4 sm:$0xff]  }
 0x21d   :  { %3250 = vmatpush1.bf16.msra.mxu1 %v5328_v59  ;;  %3725 = vmatprep.subr.bf16.mxu0 %v5393_v62  ;;  %v5429_v59 = vld [vmem:[#allocation6 + $0xf4] ss:$8 sps:$4 sm:$0xff]   ;;  %v5478_v62 = vld [vmem:[#allocation9 + $0x40] sm:$0xff]  }
 0x21e   :  { %3251 = vmatprep.subr.bf16.mxu1 %v5333_v61  ;;  %v5432_v61 = vld [vmem:[#allocation6 + $0x104] ss:$8 sps:$4 sm:$0xff]  }
 0x220   :  { %3726 = vmatpush1.bf16.msra.mxu0 %v5391_v0  ;;  %v5480_v0 = vld [vmem:[#allocation9 + $0x48] sm:$0xff]  }
 0x221   :  { %3252 = vmatpush1.bf16.msra.mxu1 %v5331_v63  ;;  %3727 = vmatprep.subr.bf16.mxu0 %v5396_v2  ;;  %v5479_v63 = vld [vmem:[#allocation9] sm:$0xff]   ;;  %v5482_v2 = vld [vmem:[#allocation9 + $0x50] sm:$0xff]  }
 0x222   :  { %3253 = vmatprep.subr.bf16.mxu1 %v5336_v1  ;;  %v5481_v1 = vld [vmem:[#allocation9 + $0x8] sm:$0xff]  }
 0x224   :  { %3728 = vmatpush1.bf16.msra.mxu0 %v5394_v4  ;;  %v5485_v4 = vld [vmem:[#allocation9 + $0x18] sm:$0xff]  }
 0x225   :  { %3254 = vmatpush1.bf16.msra.mxu1 %v5334_v3  ;;  %3729 = vmatprep.subr.bf16.mxu0 %v5399_v6  ;;  %v5484_v3 = vld [vmem:[#allocation9 + $0x58] sm:$0xff]   ;;  %v5487_v6 = vld [vmem:[#allocation9 + $0x20] sm:$0xff]  }
 0x226   :  { %3255 = vmatprep.subr.bf16.mxu1 %v5339_v5  ;;  %v5486_v5 = vld [vmem:[#allocation9 + $0x60] sm:$0xff]  }
 0x228   :  { %3730 = vmatpush1.bf16.msra.mxu0 %v5397_v8  ;;  %v5489_v8 = vld [vmem:[#allocation9 + $0x28] sm:$0xff]  }
 0x229   :  { %3256 = vmatpush1.bf16.msra.mxu1 %v5337_v7  ;;  %3731 = vmatprep.subr.bf16.mxu0 %v5402_v10  ;;  %v5488_v7 = vld [vmem:[#allocation9 + $0x68] sm:$0xff]  }
 0x22a   :  { %3257 = vmatprep.subr.bf16.mxu1 %v5342_v9  ;;  %v588_v9 = vlaneseq }
 0x22c   :  { %3732 = vmatpush1.bf16.msra.mxu0 %v5400_v12  ;;  %v5958_v10 = vshrl.u32 %v588_v9, 7  ;;  %v5961_v12 = vld [vmem:[#allocation4] sm:$0xf] }
 0x22d   :  { %3258 = vmatpush1.bf16.msra.mxu1 %v5340_v11  ;;  %3733 = vmatprep.subr.bf16.mxu0 %v5405_v14 }
 0x22e   :  { %3259 = vmatprep.subr.bf16.mxu1 %v5345_v13  ;;  %v590_v11 = vsub.s32 0, %v5958_v10  ;;  %v594_v13 = vsub.s32 1, %v5958_v10 }
 0x230   :  { %3734 = vmatpush1.bf16.msra.mxu0 %v5403_v16  ;;  %v591_v14 = vrot.slane %v5961_v12, %v590_v11 }
 0x231   :  { %3260 = vmatpush1.bf16.msra.mxu1 %v5343_v15  ;;  %3735 = vmatprep.subr.bf16.mxu0 %v5408_v18  ;;  %v595_v15 = vrot.slane %v5961_v12, %v594_v13 }
 0x232   :  { %3261 = vmatprep.subr.bf16.mxu1 %v5348_v17 }
 0x234   :  { %3736 = vmatpush1.bf16.msra.mxu0 %v5406_v20 }
 0x235   :  { %3262 = vmatpush1.bf16.msra.mxu1 %v5346_v19  ;;  %3737 = vmatprep.subr.bf16.mxu0 %v5411_v22 }
 0x236   :  { %3263 = vmatprep.subr.bf16.mxu1 %v5351_v21 }
 0x238   :  { %3738 = vmatpush1.bf16.msra.mxu0 %v5409_v24 }
 0x239   :  { %3264 = vmatpush1.bf16.msra.mxu1 %v5349_v23  ;;  %3739 = vmatprep.subr.bf16.mxu0 %v5414_v26  ;;  %v5702_v26 = vmov 0  }
 0x23a   :  { %3274 = vmatprep.subr.bf16.mxu1 %v5354_v25 }
 0x23c   :  { %3266 = vmatmul.mubr.bf16.vlgmr.msra.gmra.mrb[4].mxu1 %v5949_v50  ;;  %3740 = vmatpush1.bf16.msra.mxu0 %v5412_v31  ;;  %v5375_v50 = vld [vmem:[#allocation2 + $0xcec] ss:$16 sps:$4 sm:$0xff]  }
 0x23d   :  { %3275 = vmatpush1.bf16.msra.mxu1 %v5352_v27  ;;  %4531 = vmatprep.mubr.msk.bf16.mxu1 %vm2724_vm0, %v5861_v32  ;;  %v5421_v32 = vld [vmem:[#allocation6 + $0xd0] ss:$8 sps:$4 sm:$0xff]  }
 0x23e   :  { %3276 = vmatprep.subr.bf16.mxu1 %v5357_v29  ;;  %3741 = vmatprep.subr.bf16.mxu0 %v5417_v33  ;;  %v5430_v29 = vld [vmem:[#allocation6 + $0x100] ss:$8 sps:$4 sm:$0xff]   ;;  %v5435_v33 = vld [vmem:[#allocation6 + $0x114] ss:$8 sps:$4 sm:$0xff]  }
 0x240   :  { %3742 = vmatpush1.bf16.msra.mxu0 %v5415_v36  ;;  %v5441_v36 = vld [vmem:[#allocation6 + $0x134] ss:$8 sps:$4 sm:$0xff]  }
 0x241   :  { %3277 = vmatpush1.bf16.msra.mxu1 %v5355_v34  ;;  %3743 = vmatprep.subr.bf16.mxu0 %v5420_v37  ;;  %v5433_v34 = vld [vmem:[#allocation6 + $0x110] ss:$8 sps:$4 sm:$0xff]   ;;  %v5444_v37 = vld [vmem:[#allocation6 + $0x144] ss:$8 sps:$4 sm:$0xff]  }
 0x242   :  { %3278 = vmatprep.subr.bf16.mxu1 %v5360_v35  ;;  %v5438_v35 = vld [vmem:[#allocation6 + $0x124] ss:$8 sps:$4 sm:$0xff]  }
 0x244   :  { %3744 = vmatpush1.bf16.msra.mxu0 %v5418_v40  ;;  %v5445_v40 = vld [vmem:[#allocation6 + $0x150] ss:$8 sps:$4 sm:$0xff]  }
 0x245   :  { %3279 = vmatpush1.bf16.msra.mxu1 %v5358_v38  ;;  %3745 = vmatprep.subr.bf16.mxu0 %v5423_v41  ;;  %v5442_v38 = vld [vmem:[#allocation6 + $0x140] ss:$8 sps:$4 sm:$0xff]   ;;  %v5450_v41 = vld [vmem:[#allocation6 + $0x164] ss:$8 sps:$4 sm:$0xff]  }
 0x246   :  { %3280 = vmatprep.subr.bf16.mxu1 %v5363_v39  ;;  %v5447_v39 = vld [vmem:[#allocation6 + $0x154] ss:$8 sps:$4 sm:$0xff]  }
 0x248   :  { %3746 = vmatpush1.bf16.msra.mxu0 %v5421_v32  ;;  %v5451_v32 = vld [vmem:[#allocation6 + $0x170] ss:$8 sps:$4 sm:$0xff]  }
 0x249   :  { %3281 = vmatpush1.bf16.msra.mxu1 %v5361_v42  ;;  %3747 = vmatprep.subr.bf16.mxu0 %v5426_v57  ;;  %v5448_v42 = vld [vmem:[#allocation6 + $0x160] ss:$8 sps:$4 sm:$0xff]   ;;  %v5474_v57 = vld [vmem:[#allocation6 + $0x1e4] ss:$8 sps:$4 sm:$0xff]  }
 0x24a   :  { %3282 = vmatprep.subr.bf16.mxu1 %v5366_v43  ;;  %v5453_v43 = vld [vmem:[#allocation6 + $0x174] ss:$8 sps:$4 sm:$0xff]  }
 0x24c   :  { %3748 = vmatpush1.bf16.msra.mxu0 %v5424_v58  ;;  %v5472_v58 = vld [vmem:[#allocation6 + $0x1e0] ss:$8 sps:$4 sm:$0xff]  }
 0x24d   :  { %3283 = vmatpush1.bf16.msra.mxu1 %v5364_v44  ;;  %3749 = vmatprep.subr.bf16.mxu0 %v5429_v59  ;;  %v5456_v44 = vld [vmem:[#allocation6 + $0x184] ss:$8 sps:$4 sm:$0xff]   ;;  %v5477_v59 = vld [vmem:[#allocation6 + $0x1f4] ss:$8 sps:$4 sm:$0xff]  }
 0x24e   :  { %3284 = vmatprep.subr.bf16.mxu1 %v5369_v45  ;;  %v5454_v45 = vld [vmem:[#allocation6 + $0x180] ss:$8 sps:$4 sm:$0xff]  }
 0x250   :  { %3750 = vmatpush1.bf16.msra.mxu0 %v5427_v60  ;;  %v5475_v60 = vld [vmem:[#allocation6 + $0x1f0] ss:$8 sps:$4 sm:$0xff]  }
 0x251   :  { %3285 = vmatpush1.bf16.msra.mxu1 %v5367_v47  ;;  %3760 = vmatprep.subr.bf16.mxu0 %v5432_v61  ;;  %v5459_v47 = vld [vmem:[#allocation6 + $0x194] ss:$8 sps:$4 sm:$0xff]   ;;  %v598_v61 = vsub.s32 2, %v5958_v10 }
 0x252   :  { %3286 = vmatprep.subr.bf16.mxu1 %v5372_v48  ;;  %v5457_v48 = vld [vmem:[#allocation6 + $0x190] ss:$8 sps:$4 sm:$0xff]  }
 0x255   :  { %3287 = vmatpush1.bf16.msra.mxu1 %v5370_v49  ;;  %v5462_v49 = vld [vmem:[#allocation6 + $0x1a4] ss:$8 sps:$4 sm:$0xff]  }
 0x256   :  { %3288 = vmatprep.subr.bf16.mxu1 %v5375_v50  ;;  %v5460_v50 = vld [vmem:[#allocation6 + $0x1a0] ss:$8 sps:$4 sm:$0xff]  }
 0x259   :  { %3289 = vmatpush1.bf16.msra.mxu1 %v5373_v51  ;;  %v5465_v51 = vld [vmem:[#allocation6 + $0x1b4] ss:$8 sps:$4 sm:$0xff]  }
 0x25a   :  { %3290 = vmatprep.subr.bf16.mxu1 %v5378_v52  ;;  %v5463_v52 = vld [vmem:[#allocation6 + $0x1b0] ss:$8 sps:$4 sm:$0xff]  }
 0x25d   :  { %3291 = vmatpush1.bf16.msra.mxu1 %v5376_v53  ;;  %v5468_v53 = vld [vmem:[#allocation6 + $0x1c4] ss:$8 sps:$4 sm:$0xff]  }
 0x25e   :  { %4530 = vmatprep.subr.msk.bf16.mxu1 %vm2728_vm1, %v5379_v54  ;;  %v5466_v54 = vld [vmem:[#allocation6 + $0x1c0] ss:$8 sps:$4 sm:$0xff]  }
 0x261   :  { %3293 = vmatpush1.bf16.msra.mxu1 %v2736_v56  ;;  %v5469_v56 = vld [vmem:[#allocation6 + $0x1d0] ss:$8 sps:$4 sm:$0xff]  }
 0x262   :  { %4622 = vmatprep.subr.bf16.mxu1 %v5478_v62  ;;  %v602_v62 = vsub.s32 3, %v5958_v10  ;;  %v5496_v10 = vld [vmem:[#allocation12 + $0x10] sm:$0xff]  }
 0x264   :  { %3307 = vmatmul.mubr.bf16.vlgmr.msra.gmra.mrb[4].mxu1 %v5870_v46  ;;  %v5483_v46 = vld [vmem:[#allocation9 + $0x10] sm:$0xff]  }
 0x265   :  { %4623 = vmatpush3.bf16.msra.mxu1 %v5479_v63  ;;  %v599_v63 = vrot.slane %v5961_v12, %v598_v61 }
 0x266   :  { %4624 = vmatprep.subr.bf16.mxu1 %v5480_v0  ;;  %v603_v0 = vrot.slane %v5961_v12, %v602_v62  ;;  %v5493_v12 = vld [vmem:[#allocation9 + $0x38] sm:$0xff]  }
 0x269   :  { %4625 = vmatpush3.bf16.msra.mxu1 %v5481_v1 }
 0x26a   :  { %4626 = vmatprep.subr.bf16.mxu1 %v5482_v2 }
 0x26d   :  { %4627 = vmatpush3.bf16.msra.mxu1 %v5483_v46 }
 0x26e   :  { %4628 = vmatprep.subr.bf16.mxu1 %v5484_v3 }
 0x271   :  { %4629 = vmatpush3.bf16.msra.mxu1 %v5485_v4 }
 0x272   :  { %4630 = vmatprep.subr.bf16.mxu1 %v5486_v5 }
 0x275   :  { %4631 = vmatpush3.bf16.msra.mxu1 %v5487_v6 }
 0x276   :  { %4632 = vmatprep.subr.bf16.mxu1 %v5488_v7 }
 0x279   :  { %4633 = vmatpush3.bf16.msra.mxu1 %v5489_v8 }
 0x2e6   :  { %v2980_v16 = vpop.f32.mrb[0].mxu0 }
 0x2e7   :  { %v4673_v17 = vadd.f32 %v2980_v16, %v591_v14  ;;  %v2982_v18 = vpop.f32.mrb[1].mxu0  ;;  %v5490_v14 = vld [vmem:[#allocation9 + $0x70] sm:$0xff]   ;;  %v5492_v16 = vld [vmem:[#allocation9 + $0x78] sm:$0xff]  }
 0x2e8   :  { %v4675_v19 = vadd.f32 %v2982_v18, %v595_v15  ;;  %v2984_v20 = vpop.f32.mrb[2].mxu0  ;;  %v5491_v15 = vld [vmem:[#allocation9 + $0x30] sm:$0xff]   ;;  %4634 = vmatprep.subr.bf16.mxu1 %v5490_v14  ;;  %v3387_v18 = vld [vmem:[#allocation7] sm:$0x3] }
 0x2e9   :  { %v4674_v21 = vadd.f32 %v4673_v17, %v5917_v28  ;;  %v2985_v22 = vpop.f32.mrb[3].mxu0  ;;  %v5436_v28 = vld [vmem:[#allocation6 + $0x120] ss:$8 sps:$4 sm:$0xff]   ;;  %4635 = vmatpush3.bf16.msra.mxu1 %v5491_v15  ;;  %v5703_v17 = vmov 0.0   ;;  %v3396_v20 = vrot.slane %v3387_v18, %v594_v13 }
 0x2ea   :  { %v4676_v23 = vadd.f32 %v4675_v19, %v5919_v30  ;;  %v5439_v30 = vld [vmem:[#allocation6 + $0x130] ss:$8 sps:$4 sm:$0xff]   ;;  %4636 = vmatprep.subr.bf16.mxu1 %v5492_v16  ;;  %v3392_v19 = vrot.slane %v3387_v18, %v590_v11  ;;  %v5497_v13 = vld [vmem:[#allocation12 + $0x18] sm:$0xff]  }
 0x2eb   :  { %v3315_v24 = vpack.c.bf16 %v4674_v21, %v4674_v21  ;;  %v5495_v11 = vld [vmem:[#allocation12 + $0x8] sm:$0xff]  }
 0x2ec   :  { %v3316_v25 = vpack.c.bf16 %v4676_v23, %v4676_v23 }
 0x2ed   :  { %v3319_v31 = vmax.bf16 %v5702_v26, %v3315_v24  ;;  %4637 = vmatpush3.bf16.msra.mxu1 %v5493_v12 }
 0x2ee   :  { %v3320_v27 = vmax.bf16 %v5702_v26, %v3316_v25  ;;  %4653 = vmatprep.subr.bf16.mxu1 %v5703_v17 }
 0x2f0   :  { %3751 = vmatprep.mubr.bf16.mxu0 %v3320_v27 }
 0x2f1   :  { %3752 = vmatmul.mubr.bf16.vlgmr.msra.gmra.mrb[4].mxu0 %v3319_v31 }
 0x2f2   :  { %3761 = vmatpush1.bf16.msra.mxu0 %v5430_v29 }
 0x2f3   :  { %3762 = vmatprep.subr.bf16.mxu0 %v5435_v33 }
 0x2f6   :  { %3763 = vmatpush1.bf16.msra.mxu0 %v5433_v34  ;;  %v5494_v34 = vld [vmem:[#allocation12] sm:$0xff]  }
 0x2f7   :  { %3764 = vmatprep.subr.bf16.mxu0 %v5438_v35 }
 0x2fa   :  { %3765 = vmatpush1.bf16.msra.mxu0 %v5436_v28  ;;  %v5498_v28 = vld [vmem:[#allocation12 + $0x20] sm:$0xff]  }
 0x2fb   :  { %3766 = vmatprep.subr.bf16.mxu0 %v5441_v36  ;;  %v5499_v36 = vld [vmem:[#allocation12 + $0x28] sm:$0xff]  }
 0x2fe   :  { %3767 = vmatpush1.bf16.msra.mxu0 %v5439_v30  ;;  %v5500_v30 = vld [vmem:[#allocation12 + $0x30] sm:$0xff]  }
 0x2ff   :  { %3768 = vmatprep.subr.bf16.mxu0 %v5444_v37  ;;  %v5501_v37 = vld [vmem:[#allocation12 + $0x38] sm:$0xff]  }
 0x302   :  { %3769 = vmatpush1.bf16.msra.mxu0 %v5442_v38 }
 0x303   :  { %3770 = vmatprep.subr.bf16.mxu0 %v5447_v39  ;;  %v4596_v39 = vld [vmem:[#allocation10] ss:$0 sm:$0xff] }
 0x306   :  { %3771 = vmatpush1.bf16.msra.mxu0 %v5445_v40 }
 0x307   :  { %3772 = vmatprep.subr.bf16.mxu0 %v5450_v41 }
 0x30a   :  { %3773 = vmatpush1.bf16.msra.mxu0 %v5448_v42 }
 0x30b   :  { %3774 = vmatprep.subr.bf16.mxu0 %v5453_v43 }
 0x30e   :  { %3775 = vmatpush1.bf16.msra.mxu0 %v5451_v32 }
 0x30f   :  { %3776 = vmatprep.subr.bf16.mxu0 %v5456_v44 }
 0x312   :  { %3777 = vmatpush1.bf16.msra.mxu0 %v5454_v45 }
 0x313   :  { %3778 = vmatprep.subr.bf16.mxu0 %v5459_v47  ;;  %v4613_v47 = vld [vmem:[#allocation13] ss:$0 sm:$0xff] }
 0x316   :  { %3779 = vmatpush1.bf16.msra.mxu0 %v5457_v48 }
 0x317   :  { %3780 = vmatprep.subr.bf16.mxu0 %v5462_v49 }
 0x31a   :  { %3781 = vmatpush1.bf16.msra.mxu0 %v5460_v50 }
 0x31b   :  { %3782 = vmatprep.subr.bf16.mxu0 %v5465_v51 }
 0x31e   :  { %3783 = vmatpush1.bf16.msra.mxu0 %v5463_v52 }
 0x31f   :  { %3784 = vmatprep.subr.bf16.mxu0 %v5468_v53 }
 0x322   :  { %3785 = vmatpush1.bf16.msra.mxu0 %v5466_v54 }
 0x323   :  { %3786 = vmatprep.subr.bf16.mxu0 %v5471_v55 }
 0x326   :  { %3787 = vmatpush1.bf16.msra.mxu0 %v5469_v56 }
 0x327   :  { %3788 = vmatprep.subr.bf16.mxu0 %v5474_v57 }
 0x32a   :  { %3789 = vmatpush1.bf16.msra.mxu0 %v5472_v58 }
 0x32b   :  { %3790 = vmatprep.subr.bf16.mxu0 %v5477_v59 }
 0x32e   :  { %3791 = vmatpush1.bf16.msra.mxu0 %v5475_v60 }
 0x337   :  { %v3308_v1 = vpop.f32.mrb[4].mxu1 }
 0x338   :  { %v4677_v2 = vadd.f32 %v3308_v1, %v599_v63  ;;  %v3310_v46 = vpop.f32.mrb[5].mxu1 }
 0x339   :  { %v4678_v3 = vadd.f32 %v3310_v46, %v603_v0  ;;  %v3312_v4 = vpop.f32.mrb[6].mxu1 }
 0x33a   :  { %v3317_v5 = vpack.c.bf16 %v4677_v2, %v4677_v2  ;;  %v3313_v6 = vpop.f32.mrb[7].mxu1 }
 0x33b   :  { %v3318_v7 = vpack.c.bf16 %v4678_v3, %v4678_v3 }
 0x33c   :  { %v3321_v9 = vmax.bf16 %v5702_v26, %v3317_v5 }
 0x33d   :  { %v3322_v8 = vmax.bf16 %v5702_v26, %v3318_v7 }
 0x33f   :  { %3792 = vmatprep.mubr.bf16.mxu0 %v3322_v8 }
 0x340   :  { %3793 = vmatmul.mubr.bf16.vlgmr.msra.gmra.mrb[4].mxu0 %v3321_v9 }
 0x413   :  { %v3794_v21 = vpop.f32.mrb[4].mxu0 }
 0x414   :  { %v4679_v22 = vadd.f32 %v3794_v21, %v3392_v19  ;;  %v3796_v23 = vpop.f32.mrb[5].mxu0 }
 0x415   :  { %v4680_v24 = vadd.f32 %v3796_v23, %v3396_v20  ;;  %v3798_v25 = vpop.f32.mrb[6].mxu0 }
 0x416   :  { %v3801_v27 = vpack.c.bf16 %v4679_v22, %v4679_v22  ;;  %v3799_v29 = vpop.f32.mrb[7].mxu0 }
 0x417   :  { %v3802_v31 = vpack.c.bf16 %v4680_v24, %v4680_v24 }
 0x418   :  { %v3803_v35 = vmax.bf16 %v5702_v26, %v3801_v27 }
 0x419   :  { %v3804_v33 = vmax.bf16 %v5702_v26, %v3802_v31 }
 0x41b   :  { %3972 = vmatprep.mubr.bf16.mxu1 %v3804_v33 }
 0x41c   :  { %3973 = vmatmul.mubr.bf16.vlgmr.msra.gmra.mrb[8].mxu1 %v3803_v35 }
 0x41d   :  { %4654 = vmatpush3.bf16.msra.mxu1 %v5494_v34  ;;  %4669 = vmatprep.mubr.msk.bf16.mxu1 %vm5704_vm2, %v5703_v17 }
 0x41e   :  { %4655 = vmatprep.subr.bf16.mxu1 %v5703_v17 }
 0x421   :  { %4656 = vmatpush3.bf16.msra.mxu1 %v5495_v11 }
 0x422   :  { %4657 = vmatprep.subr.bf16.mxu1 %v5703_v17 }
 0x425   :  { %4658 = vmatpush3.bf16.msra.mxu1 %v5496_v10 }
 0x426   :  { %4659 = vmatprep.subr.bf16.mxu1 %v5703_v17 }
 0x429   :  { %4660 = vmatpush3.bf16.msra.mxu1 %v5497_v13 }
 0x42a   :  { %4661 = vmatprep.subr.bf16.mxu1 %v5703_v17 }
 0x42d   :  { %4662 = vmatpush3.bf16.msra.mxu1 %v5498_v28 }
 0x42e   :  { %4663 = vmatprep.subr.bf16.mxu1 %v5703_v17 }
 0x431   :  { %4664 = vmatpush3.bf16.msra.mxu1 %v5499_v36 }
 0x432   :  { %4665 = vmatprep.subr.bf16.mxu1 %v5703_v17 }
 0x435   :  { %4666 = vmatpush3.bf16.msra.mxu1 %v5500_v30 }
 0x436   :  { %4667 = vmatprep.subr.bf16.mxu1 %v5703_v17 }
 0x439   :  { %4668 = vmatpush3.bf16.msra.mxu1 %v5501_v37 }
 0x4ef   :  { %v4638_v38 = vpop.f32.mrb[8].mxu1 }
 0x4f0   :  { %v4639_v40 = vpop.f32.mrb[9].mxu1 }
 0x4f1   :  { %v4640_v41 = vadd.f32 %v4639_v40, %v4638_v38  ;;  %v4641_v42 = vpop.f32.mrb[10].mxu1 }
 0x4f2   :  { %v4642_v43 = vpop.f32.mrb[11].mxu1 }
 0x4f3   :  { %v3975_v32 = vadd.f32 %v4640_v41, %v4596_v39 }
 0x4f5   :  { %v3980_v44 = vpack.c.bf16 %v3975_v32, %v3975_v32 }
 0x4f7   :  { %v3981_v45 = vmax.bf16 %v5702_v26, %v3980_v44 }
 0x4f9   :  { %4670 = vmatmul.mubr.bf16.vlgmr.msra.gmra.mrb[12].mxu1 %v3981_v45 }
 0x5cc   :  { %v4087_v48 = vpop.f32.mrb[12].mxu1 }
 0x5cd   :  { %v4088_v49 = vadd.f32 %v4613_v47, %v4087_v48  ;;  %v4671_v50 = vpop.f32.mrb[13].mxu1 }
 0x5ce   :  { %v4090_v51 = vpop.f32.mrb[14].mxu1 }
 0x5cf   :  { %v4093_v52 = vpack.c.bf16 %v4088_v49, %v4088_v49  ;;  %v4672_v53 = vpop.f32.mrb[15].mxu1 }
 0x5d1   :  { %4094 = vst [vmem:[%s5999_s9] sm:$0xf] %v4093_v52 }
 0x5d2   :  { %4099 = vsyncpa [#allocation3], 1 }
 0x5d3   :  { %4100 = vsyncpa [#allocation5], 1 }
 0x5d4   :  { %4101 = vsyncpa [#allocation8], 1 }
 0x5d5   :  { %4102 = vsyncpa [#allocation11], 1 }
 0x5d6   :  { %4103 = vsyncpa [#allocation14], 1 }

</bundles_post_ra>
